<compile_context>
chip_gen: v5e
topology: v5e:2x2
jax: 0.10.0
libtpu: 0.0.40
codegen_flags: <defaults>
</compile_context>

<pallas_src>
from functools import partial

import jax
import jax.numpy as jnp
from jax import lax
from jax.experimental import pallas as pl
from jax.experimental.pallas import tpu as pltpu


def _cdiv(a, b):
    return -(-a // b)


# ----------------------------------------------------------------------------
# Kernel
# ----------------------------------------------------------------------------
def _xcit_attention_kernel(x_ref, wqkv_ref, wproj_ref, bproj_ref, bias_ref,
                           out_ref, qn_ref, kn_ref, v_ref, ctx_ref,
                           *, temperature):
    # x_ref:    (Bt, Npad, C)  bf16   current block of batch elements
    # wqkv_ref: (C, 3C)        bf16   fused q|k|v projection (qkv_bias=False)
    # wproj_ref:(C, C)         bf16   output projection weight
    # bproj_ref:(1, C)         f32    output projection bias
    # bias_ref: (C, C)         f32    additive mask: 0 keep, -1e6 masked/off-head
    # out_ref:  (Bt, Npad, C)  f32
    # qn/kn/v/ctx_ref: (Bt, Npad, C) bf16 VMEM scratch
    bt, npad, c = x_ref.shape
    f32, bf16 = jnp.float32, jnp.bfloat16

    # ---- Fused QKV projection: one big-M (Bt*Npad, C) @ (C, 3C) MXU matmul.
    x2 = x_ref[...].reshape(bt * npad, c)
    qkv = jnp.dot(x2, wqkv_ref[...], preferred_element_type=f32)   # (Bt*Npad, 3C)

    q3 = qkv[:, :c].reshape(bt, npad, c)
    k3 = qkv[:, c:2 * c].reshape(bt, npad, c)
    v3 = qkv[:, 2 * c:].reshape(bt, npad, c)

    # ---- F.normalize over the token axis (f32); temperature folded into q.
    # rsqrt(max(sumsq, eps^2)) == 1 / max(norm, eps) with eps = 1e-12.
    q_inv = lax.rsqrt(jnp.maximum(jnp.sum(q3 * q3, axis=1, keepdims=True), 1e-24))
    k_inv = lax.rsqrt(jnp.maximum(jnp.sum(k3 * k3, axis=1, keepdims=True), 1e-24))
    qn_ref[...] = (q3 * (q_inv * temperature)).astype(bf16)
    kn_ref[...] = (k3 * k_inv).astype(bf16)
    v_ref[...] = v3.astype(bf16)

    bias = bias_ref[...]                                           # (C, C) f32

    # ---- Per-batch-element attention: only one (C, C) triple live at a time.
    @pl.loop(0, bt)
    def _(b):
        qb = qn_ref[b]                                             # (Npad, C) bf16
        kb = kn_ref[b]
        # gram[d, e] = sum_n q[n, d] * k[n, e]   (lhs transpose folded into MXU)
        gram = lax.dot_general(qb, kb, (((0,), (0,)), ((), ())),
                               preferred_element_type=f32)         # (C, C)
        logits = gram + bias
        m = jnp.max(logits, axis=-1, keepdims=True)
        e = jnp.exp(logits - m)
        s = jnp.sum(e, axis=-1, keepdims=True)
        attn = (e * pl.reciprocal(s, approx=True)).astype(bf16)    # (C, C)
        # ctx[n, d] = sum_e v[n, e] * attn[d, e]
        ctx_ref[b] = lax.dot_general(v_ref[b], attn, (((1,), (1,)), ((), ())),
                                     preferred_element_type=f32).astype(bf16)

    # ---- Single output projection (big-M) + bias.
    y = jnp.dot(ctx_ref[...].reshape(bt * npad, c), wproj_ref[...],
                preferred_element_type=f32) + bproj_ref[...]
    out_ref[...] = y.reshape(bt, npad, c).astype(out_ref.dtype)


# ----------------------------------------------------------------------------
# VMEM model / tiling
# ----------------------------------------------------------------------------
def _vmem_capacity_bytes():
    try:
        info = pltpu.get_tpu_info()
        cap = int(getattr(info, "vmem_capacity_bytes", 0))
        if cap > 0:
            return cap
    except Exception:
        pass
    return 64 * 2**20          # v7x-safe default (smallest current part)


def _vmem_model(n_pad, c):
    # Bytes that scale with the rows (Bt * Npad) of one grid step.
    per_row = c * (2 * 2          # x block, bf16, double-buffered
                   + 2 * 4        # out block, f32, double-buffered
                   + 3 * 4 + 4    # fused qkv f32 result + one f32 normalise temp
                   + 4 * 2)       # qn / kn / v / ctx bf16 scratch
    # Grid-invariant bytes: weights / bias / mask (worst case double-buffered)
    # plus the single live (C, C) attention triple and softmax temporaries.
    const = 2 * ((3 * c * c + c * c) * 2 + c * c * 4 + c * 4) + 6 * c * c * 4
    return per_row, const


def _build_xcit_call(b_pad, n_pad, c, bt, temperature, vmem_limit,
                     single_buffer_consts):
    f32, bf16 = jnp.float32, jnp.bfloat16

    pm = {}
    if single_buffer_consts and hasattr(pl, "Buffered"):
        pm = {"pipeline_mode": pl.Buffered(1)}   # grid-invariant -> 1 buffer

    def const_spec(shape):
        zeros = (0,) * len(shape)
        return pl.BlockSpec(shape, lambda b, _z=zeros: _z, **pm)

    kernel = partial(_xcit_attention_kernel, temperature=float(temperature))
    return pl.pallas_call(
        kernel,
        out_shape=jax.ShapeDtypeStruct((b_pad, n_pad, c), f32),
        grid_spec=pltpu.PrefetchScalarGridSpec(
            num_scalar_prefetch=0,
            grid=(b_pad // bt,),
            in_specs=[
                pl.BlockSpec((bt, n_pad, c), lambda b: (b, 0, 0)),  # x (bf16)
                const_spec((c, 3 * c)),                             # qkv weight (bf16)
                const_spec((c, c)),                                 # proj weight (bf16)
                const_spec((1, c)),                                 # proj bias (f32)
                const_spec((c, c)),                                 # additive mask (f32)
            ],
            out_specs=pl.BlockSpec((bt, n_pad, c), lambda b: (b, 0, 0)),
            scratch_shapes=[
                pltpu.VMEM((bt, n_pad, c), bf16),   # qn (temperature folded in)
                pltpu.VMEM((bt, n_pad, c), bf16),   # kn
                pltpu.VMEM((bt, n_pad, c), bf16),   # v
                pltpu.VMEM((bt, n_pad, c), bf16),   # ctx
            ],
        ),
        compiler_params=pltpu.CompilerParams(
            dimension_semantics=("parallel",),
            vmem_limit_bytes=int(vmem_limit)),
    )


# ----------------------------------------------------------------------------
# Wrapper
# ----------------------------------------------------------------------------
def xcit_attention(x, w_qkv, w_proj, b_proj, attn_mask, *, n_head, temperature,
                   block_b=None):
    """x: (B, N, C) f32; w_qkv: (C, 3C) pre-transposed (q|k|v along columns);
    w_proj: (C, C); b_proj: (C,); attn_mask: (Dh, Dh) bool (True = keep)."""
    B, N, C = x.shape
    assert C % n_head == 0
    Dh = C // n_head
    assert attn_mask.shape == (Dh, Dh)

    # --- Token padding to a bf16-sublane-friendly multiple (zero tokens are
    #     exact no-ops: no qkv bias; they contribute 0 to L2 norms and gram).
    Npad = _cdiv(N, 16) * 16

    per_row, const = _vmem_model(Npad, C)
    vmem_cap = _vmem_capacity_bytes()

    # --- Batch block size from the full per-step VMEM footprint.
    if block_b is None:
        budget = int(vmem_cap * 0.55)               # leave compiler headroom
        bt_cap = max(1, (budget - const) // (per_row * Npad))
        if B >= 2:
            bt_cap = min(bt_cap, _cdiv(B, 2))       # >= 2 grid steps (2 TCs on v7x)
        bt_cap = max(1, min(bt_cap, B))
        divs = [d for d in range(1, bt_cap + 1) if B % d == 0]
        block_b = max(divs) if divs else 1
        if block_b * 2 <= bt_cap:                   # divisor wastes >2x -> pad batch
            block_b = bt_cap
    Bt = int(block_b)
    B_pad = _cdiv(B, Bt) * Bt

    est = const + per_row * Npad * Bt
    vmem_limit = int(min(vmem_cap * 0.85, max(32 * 2**20, est * 1.4)))

    # --- Parameter prep (plain JAX): bf16 MXU operands, f32 accumulation in-kernel.
    x_bf = x.astype(jnp.bfloat16)
    if B_pad != B or Npad != N:
        x_bf = jnp.pad(x_bf, ((0, B_pad - B), (0, Npad - N), (0, 0)))
    wqkv_bf = w_qkv.astype(jnp.bfloat16)            # single fused (C, 3C) slab
    wproj_bf = w_proj.astype(jnp.bfloat16)
    bproj2 = b_proj.reshape(1, C).astype(jnp.float32)

    # Full (C, C) additive mask: 0 where (same head AND attn_mask[d, e]), else -1e6.
    c_idx = jnp.arange(C)
    same_head = (c_idx[:, None] // Dh) == (c_idx[None, :] // Dh)
    d_idx = c_idx % Dh
    keep = same_head & attn_mask[d_idx[:, None], d_idx[None, :]]
    bias_full = jnp.where(keep, 0.0, -1e6).astype(jnp.float32)

    out = None
    last_err = None
    # Try single-buffered invariant operands first; fall back to default
    # (double) buffering if this Pallas version rejects pl.Buffered(1).
    for single_buffer_consts in (True, False):
        call = _build_xcit_call(B_pad, Npad, C, Bt, temperature, vmem_limit,
                                single_buffer_consts)
        try:
            out = jax.block_until_ready(
                call(x_bf, wqkv_bf, wproj_bf, bproj2, bias_full))
            break
        except Exception as e:
            last_err = e
    if out is None:
        raise last_err
    return out[:B, :N, :]


# ----------------------------------------------------------------------------
# Pure-JAX reference (transcription of the PyTorch forward)
# ----------------------------------------------------------------------------
def _reference(x, w_qkv, w_proj, b_proj, attn_mask, *, n_head, temperature,
               mm_dtype=jnp.float32):
    """mm_dtype controls the matmul operand dtype (f32 = true module semantics,
    bf16 = matched to the kernel's MXU precision); accumulation is always f32."""
    B, N, C = x.shape
    Dh = C // n_head
    f32 = jnp.float32
    qkv = jnp.dot(x.astype(mm_dtype), w_qkv.astype(mm_dtype),
                  preferred_element_type=f32)                    # (B, N, 3C)
    qkv = qkv.reshape(B, N, 3, n_head, Dh).transpose(2, 0, 3, 1, 4)
    q, k, v = qkv[0], qkv[1], qkv[2]                             # (B, H, N, Dh)
    q = jnp.swapaxes(q, -2, -1)                                  # (B, H, Dh, N)
    k = jnp.swapaxes(k, -2, -1)
    v = jnp.swapaxes(v, -2, -1)
    q = q / jnp.maximum(jnp.linalg.norm(q, axis=-1, keepdims=True), 1e-12)
    k = k / jnp.maximum(jnp.linalg.norm(k, axis=-1, keepdims=True), 1e-12)
    attn = jnp.einsum('bhdn,bhen->bhde', q.astype(mm_dtype), k.astype(mm_dtype),
                      preferred_element_type=f32) * temperature  # (B, H, Dh, Dh)
    attn = jnp.where(attn_mask[None, None], attn, -1e6)
    attn = jax.nn.softmax(attn, axis=-1)
    out = jnp.einsum('bhde,bhen->bhdn', attn.astype(mm_dtype), v.astype(mm_dtype),
                     preferred_element_type=f32)                 # (B, H, Dh, N)
    out = out.transpose(0, 3, 1, 2).reshape(B, N, C)
    return jnp.dot(out.astype(mm_dtype), w_proj.astype(mm_dtype),
                   preferred_element_type=f32) + b_proj


if __name__ == "__main__":
    # Small shapes; N=12 deliberately exercises the token-padding path (12 -> 16).
    B, N, C, H = 4, 12, 128, 4
    Dh = C // H
    temp = 0.8

    key = jax.random.PRNGKey(0)
    kx, kqkv, kproj, kbias = jax.random.split(key, 4)

    x = jax.random.normal(kx, (B, N, C), dtype=jnp.float32)
    # Deterministic synthetic parameters (pre-transposed to (in, out)).
    w_qkv = jax.random.normal(kqkv, (C, 3 * C), dtype=jnp.float32) * 0.05
    w_proj = jax.random.normal(kproj, (C, C), dtype=jnp.float32) * 0.05
    b_proj = jax.random.normal(kbias, (C,), dtype=jnp.float32) * 0.05

    # Banded boolean (Dh, Dh) mask (True = keep); every row keeps >= 1 entry.
    ii = jnp.arange(Dh)
    attn_mask = jnp.abs(ii[:, None] - ii[None, :]) <= 6

    out = xcit_attention(x, w_qkv, w_proj, b_proj, attn_mask,
                         n_head=H, temperature=temp)
    out = jax.block_until_ready(out)

    # Structural check: reference with the same bf16 MXU operand precision.
    ref_bf16 = _reference(x, w_qkv, w_proj, b_proj, attn_mask,
                          n_head=H, temperature=temp, mm_dtype=jnp.bfloat16)
    # Numerical check: full-f32 reference (true module semantics).
    ref_f32 = _reference(x, w_qkv, w_proj, b_proj, attn_mask,
                         n_head=H, temperature=temp, mm_dtype=jnp.float32)

    err_bf = float(jnp.max(jnp.abs(out - ref_bf16)))
    err_f32 = float(jnp.max(jnp.abs(out - ref_f32)))
    assert err_bf < 1.5e-2, f"mismatch vs matched-precision reference: {err_bf}"
    assert err_f32 < 3e-2, f"mismatch vs f32 reference: {err_f32}"

    print("KERNEL_OK")
</pallas_src>

<mosaic_0001>
module attributes {stable_mosaic.version = 11 : i64} {
  func.func @_xcit_attention_kernel(%arg0: i32, %arg1: memref<2x16x128xbf16, #tpu.memory_space<vmem>>, %arg2: memref<128x384xbf16, #tpu.memory_space<vmem>>, %arg3: memref<128x128xbf16, #tpu.memory_space<vmem>>, %arg4: memref<1x128xf32, #tpu.memory_space<vmem>>, %arg5: memref<128x128xf32, #tpu.memory_space<vmem>>, %arg6: memref<2x16x128xf32, #tpu.memory_space<vmem>>, %arg7: memref<2x16x128xbf16, #tpu.memory_space<vmem>>, %arg8: memref<2x16x128xbf16, #tpu.memory_space<vmem>>, %arg9: memref<2x16x128xbf16, #tpu.memory_space<vmem>>, %arg10: memref<2x16x128xbf16, #tpu.memory_space<vmem>>) attributes {dimension_semantics = [#tpu.dimension_semantics<parallel>], iteration_bounds = array<i64: 2>, scalar_prefetch = 0 : i64, scratch_operands = 4 : i64, tpu.core_type = #tpu.core_type<tc>, window_params = [{transform_indices = @transform_0, window_bounds = array<i64: 2, 16, 128>}, {pipeline_mode = #tpu.pipeline_mode<synchronous>, transform_indices = @transform_1, window_bounds = array<i64: 128, 384>}, {pipeline_mode = #tpu.pipeline_mode<synchronous>, transform_indices = @transform_2, window_bounds = array<i64: 128, 128>}, {pipeline_mode = #tpu.pipeline_mode<synchronous>, transform_indices = @transform_3, window_bounds = array<i64: 1, 128>}, {pipeline_mode = #tpu.pipeline_mode<synchronous>, transform_indices = @transform_4, window_bounds = array<i64: 128, 128>}, {transform_indices = @transform_5, window_bounds = array<i64: 2, 16, 128>}]} {
    %c0 = arith.constant 0 : index
    %c0_0 = arith.constant 0 : index
    %c0_1 = arith.constant 0 : index
    %0 = vector.load %arg1[%c0, %c0_0, %c0_1] : memref<2x16x128xbf16, #tpu.memory_space<vmem>>, vector<2x16x128xbf16>
    %1 = vector.shape_cast %0 : vector<2x16x128xbf16> to vector<32x128xbf16>
    %c0_2 = arith.constant 0 : index
    %c0_3 = arith.constant 0 : index
    %2 = vector.load %arg2[%c0_2, %c0_3] : memref<128x384xbf16, #tpu.memory_space<vmem>>, vector<128x384xbf16>
    %cst = arith.constant dense<0.000000e+00> : vector<32x384xf32>
    %3 = tpu.matmul %1, %2, %cst {dimension_numbers = #tpu.dot_dimension_numbers<[1], [0], [0], [1], [0, 0, 1, 1], [], []>} : vector<32x128xbf16>, vector<128x384xbf16>, vector<32x384xf32> -> vector<32x384xf32>
    %4 = vector.extract_strided_slice %3 {offsets = [0, 0], sizes = [32, 128], strides = [1, 1]} : vector<32x384xf32> to vector<32x128xf32>
    %5 = vector.shape_cast %4 : vector<32x128xf32> to vector<2x16x128xf32>
    %6 = vector.extract_strided_slice %3 {offsets = [0, 128], sizes = [32, 128], strides = [1, 1]} : vector<32x384xf32> to vector<32x128xf32>
    %7 = vector.shape_cast %6 : vector<32x128xf32> to vector<2x16x128xf32>
    %8 = vector.extract_strided_slice %3 {offsets = [0, 256], sizes = [32, 128], strides = [1, 1]} : vector<32x384xf32> to vector<32x128xf32>
    %9 = vector.shape_cast %8 : vector<32x128xf32> to vector<2x16x128xf32>
    %10 = arith.mulf %5, %5 : vector<2x16x128xf32>
    %cst_4 = arith.constant dense<0.000000e+00> : vector<2x128xf32>
    %11 = vector.multi_reduction <add>, %10, %cst_4 [1] : vector<2x16x128xf32> to vector<2x128xf32>
    %12 = vector.shape_cast %11 : vector<2x128xf32> to vector<2x1x128xf32>
    %cst_5 = arith.constant 1.000000e-24 : f32
    %13 = vector.broadcast %cst_5 : f32 to vector<2x1x128xf32>
    %14 = arith.maximumf %12, %13 : vector<2x1x128xf32>
    %15 = math.rsqrt %14 : vector<2x1x128xf32>
    %16 = arith.mulf %7, %7 : vector<2x16x128xf32>
    %cst_6 = arith.constant dense<0.000000e+00> : vector<2x128xf32>
    %17 = vector.multi_reduction <add>, %16, %cst_6 [1] : vector<2x16x128xf32> to vector<2x128xf32>
    %18 = vector.shape_cast %17 : vector<2x128xf32> to vector<2x1x128xf32>
    %cst_7 = arith.constant 1.000000e-24 : f32
    %19 = vector.broadcast %cst_7 : f32 to vector<2x1x128xf32>
    %20 = arith.maximumf %18, %19 : vector<2x1x128xf32>
    %21 = math.rsqrt %20 : vector<2x1x128xf32>
    %cst_8 = arith.constant 8.000000e-01 : f32
    %22 = vector.broadcast %cst_8 : f32 to vector<2x1x128xf32>
    %23 = arith.mulf %15, %22 : vector<2x1x128xf32>
    %24 = vector.broadcast %23 : vector<2x1x128xf32> to vector<2x16x128xf32>
    %25 = arith.mulf %5, %24 : vector<2x16x128xf32>
    %26 = arith.truncf %25 : vector<2x16x128xf32> to vector<2x16x128xbf16>
    %c0_9 = arith.constant 0 : index
    %c0_10 = arith.constant 0 : index
    %c0_11 = arith.constant 0 : index
    %27 = vector.load %arg7[%c0_9, %c0_10, %c0_11] : memref<2x16x128xbf16, #tpu.memory_space<vmem>>, vector<2x16x128xbf16>
    tpu.vector_store %arg7[%c0_9, %c0_10, %c0_11], %26 {strides = array<i32>} : memref<2x16x128xbf16, #tpu.memory_space<vmem>>, vector<2x16x128xbf16>,
    %28 = vector.broadcast %21 : vector<2x1x128xf32> to vector<2x16x128xf32>
    %29 = arith.mulf %7, %28 : vector<2x16x128xf32>
    %30 = arith.truncf %29 : vector<2x16x128xf32> to vector<2x16x128xbf16>
    %c0_12 = arith.constant 0 : index
    %c0_13 = arith.constant 0 : index
    %c0_14 = arith.constant 0 : index
    %31 = vector.load %arg8[%c0_12, %c0_13, %c0_14] : memref<2x16x128xbf16, #tpu.memory_space<vmem>>, vector<2x16x128xbf16>
    tpu.vector_store %arg8[%c0_12, %c0_13, %c0_14], %30 {strides = array<i32>} : memref<2x16x128xbf16, #tpu.memory_space<vmem>>, vector<2x16x128xbf16>,
    %32 = arith.truncf %9 : vector<2x16x128xf32> to vector<2x16x128xbf16>
    %c0_15 = arith.constant 0 : index
    %c0_16 = arith.constant 0 : index
    %c0_17 = arith.constant 0 : index
    %33 = vector.load %arg9[%c0_15, %c0_16, %c0_17] : memref<2x16x128xbf16, #tpu.memory_space<vmem>>, vector<2x16x128xbf16>
    tpu.vector_store %arg9[%c0_15, %c0_16, %c0_17], %32 {strides = array<i32>} : memref<2x16x128xbf16, #tpu.memory_space<vmem>>, vector<2x16x128xbf16>,
    %c0_18 = arith.constant 0 : index
    %c0_19 = arith.constant 0 : index
    %34 = vector.load %arg5[%c0_18, %c0_19] : memref<128x128xf32, #tpu.memory_space<vmem>>, vector<128x128xf32>
    %c0_i32 = arith.constant 0 : i32
    %c2_i32 = arith.constant 2 : i32
    %35 = arith.addi %c0_i32, %c2_i32 : i32
    %c1_i32 = arith.constant 1 : i32
    scf.for %arg11 = %c0_i32 to %35 step %c1_i32  : i32 {
      %c1_i32_32 = arith.constant 1 : i32
      %45 = arith.muli %arg11, %c1_i32_32 : i32
      %c0_i32_33 = arith.constant 0 : i32
      %46 = arith.addi %c0_i32_33, %45 : i32
      %47 = arith.index_cast %46 : i32 to index
      %c0_34 = arith.constant 0 : index
      %c0_35 = arith.constant 0 : index
      %48 = vector.load %arg7[%47, %c0_34, %c0_35] : memref<2x16x128xbf16, #tpu.memory_space<vmem>>, vector<1x16x128xbf16>
      %49 = vector.shape_cast %48 : vector<1x16x128xbf16> to vector<16x128xbf16>
      %50 = arith.index_cast %46 : i32 to index
      %c0_36 = arith.constant 0 : index
      %c0_37 = arith.constant 0 : index
      %51 = vector.load %arg8[%50, %c0_36, %c0_37] : memref<2x16x128xbf16, #tpu.memory_space<vmem>>, vector<1x16x128xbf16>
      %52 = vector.shape_cast %51 : vector<1x16x128xbf16> to vector<16x128xbf16>
      %cst_38 = arith.constant dense<0.000000e+00> : vector<128x128xf32>
      %53 = tpu.matmul %49, %52, %cst_38 {dimension_numbers = #tpu.dot_dimension_numbers<[0], [0], [1], [1], [0, 1, 1, 1], [], []>} : vector<16x128xbf16>, vector<16x128xbf16>, vector<128x128xf32> -> vector<128x128xf32>
      %54 = arith.addf %53, %34 : vector<128x128xf32>
      %cst_39 = arith.constant dense<0xFF800000> : vector<128xf32>
      %55 = vector.multi_reduction <maximumf>, %54, %cst_39 [1] : vector<128x128xf32> to vector<128xf32>
      %56 = vector.shape_cast %55 : vector<128xf32> to vector<128x1xf32>
      %57 = vector.broadcast %56 : vector<128x1xf32> to vector<128x128xf32>
      %58 = arith.subf %54, %57 : vector<128x128xf32>
      %59 = math.exp %58 : vector<128x128xf32>
      %cst_40 = arith.constant dense<0.000000e+00> : vector<128xf32>
      %60 = vector.multi_reduction <add>, %59, %cst_40 [1] : vector<128x128xf32> to vector<128xf32>
      %61 = vector.shape_cast %60 : vector<128xf32> to vector<128x1xf32>
      %62 = tpu.reciprocal %61 {approx = true} : vector<128x1xf32> -> vector<128x1xf32>
      %63 = vector.broadcast %62 : vector<128x1xf32> to vector<128x128xf32>
      %64 = arith.mulf %59, %63 : vector<128x128xf32>
      %65 = arith.truncf %64 : vector<128x128xf32> to vector<128x128xbf16>
      %66 = arith.index_cast %46 : i32 to index
      %c0_41 = arith.constant 0 : index
      %c0_42 = arith.constant 0 : index
      %67 = vector.load %arg9[%66, %c0_41, %c0_42] : memref<2x16x128xbf16, #tpu.memory_space<vmem>>, vector<1x16x128xbf16>
      %68 = vector.shape_cast %67 : vector<1x16x128xbf16> to vector<16x128xbf16>
      %cst_43 = arith.constant dense<0.000000e+00> : vector<16x128xf32>
      %69 = tpu.matmul %68, %65, %cst_43 {dimension_numbers = #tpu.dot_dimension_numbers<[1], [1], [0], [0], [0, 0, 1, 0], [], []>} : vector<16x128xbf16>, vector<128x128xbf16>, vector<16x128xf32> -> vector<16x128xf32>
      %70 = arith.truncf %69 : vector<16x128xf32> to vector<16x128xbf16>
      %71 = arith.index_cast %46 : i32 to index
      %c0_44 = arith.constant 0 : index
      %c0_45 = arith.constant 0 : index
      %72 = vector.load %arg10[%71, %c0_44, %c0_45] : memref<2x16x128xbf16, #tpu.memory_space<vmem>>, vector<1x16x128xbf16>
      %73 = vector.shape_cast %72 : vector<1x16x128xbf16> to vector<16x128xbf16>
      %74 = vector.shape_cast %70 : vector<16x128xbf16> to vector<1x16x128xbf16>
      tpu.vector_store %arg10[%71, %c0_44, %c0_45], %74 {strides = array<i32>} : memref<2x16x128xbf16, #tpu.memory_space<vmem>>, vector<1x16x128xbf16>,
    }
    %c2_i32_20 = arith.constant 2 : i32
    %c0_21 = arith.constant 0 : index
    %c0_22 = arith.constant 0 : index
    %c0_23 = arith.constant 0 : index
    %36 = vector.load %arg10[%c0_21, %c0_22, %c0_23] : memref<2x16x128xbf16, #tpu.memory_space<vmem>>, vector<2x16x128xbf16>
    %37 = vector.shape_cast %36 : vector<2x16x128xbf16> to vector<32x128xbf16>
    %c0_24 = arith.constant 0 : index
    %c0_25 = arith.constant 0 : index
    %38 = vector.load %arg3[%c0_24, %c0_25] : memref<128x128xbf16, #tpu.memory_space<vmem>>, vector<128x128xbf16>
    %cst_26 = arith.constant dense<0.000000e+00> : vector<32x128xf32>
    %39 = tpu.matmul %37, %38, %cst_26 {dimension_numbers = #tpu.dot_dimension_numbers<[1], [0], [0], [1], [0, 0, 1, 1], [], []>} : vector<32x128xbf16>, vector<128x128xbf16>, vector<32x128xf32> -> vector<32x128xf32>
    %c0_27 = arith.constant 0 : index
    %c0_28 = arith.constant 0 : index
    %40 = vector.load %arg4[%c0_27, %c0_28] : memref<1x128xf32, #tpu.memory_space<vmem>>, vector<1x128xf32>
    %41 = vector.broadcast %40 : vector<1x128xf32> to vector<32x128xf32>
    %42 = arith.addf %39, %41 : vector<32x128xf32>
    %43 = vector.shape_cast %42 : vector<32x128xf32> to vector<2x16x128xf32>
    %c0_29 = arith.constant 0 : index
    %c0_30 = arith.constant 0 : index
    %c0_31 = arith.constant 0 : index
    %44 = vector.load %arg6[%c0_29, %c0_30, %c0_31] : memref<2x16x128xf32, #tpu.memory_space<vmem>>, vector<2x16x128xf32>
    tpu.vector_store %arg6[%c0_29, %c0_30, %c0_31], %43 {strides = array<i32>} : memref<2x16x128xf32, #tpu.memory_space<vmem>>, vector<2x16x128xf32>,
    return
  }
  func.func @transform_0(%arg0: i32) -> (i32, i32, i32) {
    %c0_i32 = arith.constant 0 : i32
    %c0_i32_0 = arith.constant 0 : i32
    %c0_i32_1 = arith.constant 0 : i32
    return %arg0, %c0_i32, %c0_i32_0 : i32, i32, i32
  }
  func.func @transform_1(%arg0: i32) -> (i32, i32) {
    %c0_i32 = arith.constant 0 : i32
    %c0_i32_0 = arith.constant 0 : i32
    %c0_i32_1 = arith.constant 0 : i32
    return %c0_i32, %c0_i32_0 : i32, i32
  }
  func.func @transform_2(%arg0: i32) -> (i32, i32) {
    %c0_i32 = arith.constant 0 : i32
    %c0_i32_0 = arith.constant 0 : i32
    %c0_i32_1 = arith.constant 0 : i32
    return %c0_i32, %c0_i32_0 : i32, i32
  }
  func.func @transform_3(%arg0: i32) -> (i32, i32) {
    %c0_i32 = arith.constant 0 : i32
    %c0_i32_0 = arith.constant 0 : i32
    %c0_i32_1 = arith.constant 0 : i32
    return %c0_i32, %c0_i32_0 : i32, i32
  }
  func.func @transform_4(%arg0: i32) -> (i32, i32) {
    %c0_i32 = arith.constant 0 : i32
    %c0_i32_0 = arith.constant 0 : i32
    %c0_i32_1 = arith.constant 0 : i32
    return %c0_i32, %c0_i32_0 : i32, i32
  }
  func.func @transform_5(%arg0: i32) -> (i32, i32, i32) {
    %c0_i32 = arith.constant 0 : i32
    %c0_i32_0 = arith.constant 0 : i32
    %c0_i32_1 = arith.constant 0 : i32
    return %arg0, %c0_i32, %c0_i32_0 : i32, i32, i32
  }
}

module attributes {stable_mosaic.version = 11 : i64} {
  func.func @_xcit_attention_kernel(%arg0: i32, %arg1: memref<2x16x128xbf16, #tpu.memory_space<vmem>>, %arg2: memref<128x384xbf16, #tpu.memory_space<vmem>>, %arg3: memref<128x128xbf16, #tpu.memory_space<vmem>>, %arg4: memref<1x128xf32, #tpu.memory_space<vmem>>, %arg5: memref<128x128xf32, #tpu.memory_space<vmem>>, %arg6: memref<2x16x128xf32, #tpu.memory_space<vmem>>, %arg7: memref<2x16x128xbf16, #tpu.memory_space<vmem>>, %arg8: memref<2x16x128xbf16, #tpu.memory_space<vmem>>, %arg9: memref<2x16x128xbf16, #tpu.memory_space<vmem>>, %arg10: memref<2x16x128xbf16, #tpu.memory_space<vmem>>) attributes {dimension_semantics = [#tpu.dimension_semantics<parallel>], iteration_bounds = array<i64: 2>, scalar_prefetch = 0 : i64, scratch_operands = 4 : i64, tpu.core_type = #tpu.core_type<tc>, window_params = [{transform_indices = @transform_0, window_bounds = array<i64: 2, 16, 128>}, {pipeline_mode = #tpu.pipeline_mode<synchronous>, transform_indices = @transform_1, window_bounds = array<i64: 128, 384>}, {pipeline_mode = #tpu.pipeline_mode<synchronous>, transform_indices = @transform_2, window_bounds = array<i64: 128, 128>}, {pipeline_mode = #tpu.pipeline_mode<synchronous>, transform_indices = @transform_3, window_bounds = array<i64: 1, 128>}, {pipeline_mode = #tpu.pipeline_mode<synchronous>, transform_indices = @transform_4, window_bounds = array<i64: 128, 128>}, {transform_indices = @transform_5, window_bounds = array<i64: 2, 16, 128>}]} {
    %c0 = arith.constant 0 : index
    %c0_0 = arith.constant 0 : index
    %c0_1 = arith.constant 0 : index
    %0 = vector.load %arg1[%c0, %c0_0, %c0_1] : memref<2x16x128xbf16, #tpu.memory_space<vmem>>, vector<2x16x128xbf16>
    %1 = vector.shape_cast %0 : vector<2x16x128xbf16> to vector<32x128xbf16>
    %c0_2 = arith.constant 0 : index
    %c0_3 = arith.constant 0 : index
    %2 = vector.load %arg2[%c0_2, %c0_3] : memref<128x384xbf16, #tpu.memory_space<vmem>>, vector<128x384xbf16>
    %cst = arith.constant dense<0.000000e+00> : vector<32x384xf32>
    %3 = tpu.matmul %1, %2, %cst {dimension_numbers = #tpu.dot_dimension_numbers<[1], [0], [0], [1], [0, 0, 1, 1], [], []>} : vector<32x128xbf16>, vector<128x384xbf16>, vector<32x384xf32> -> vector<32x384xf32>
    %4 = vector.extract_strided_slice %3 {offsets = [0, 0], sizes = [32, 128], strides = [1, 1]} : vector<32x384xf32> to vector<32x128xf32>
    %5 = vector.shape_cast %4 : vector<32x128xf32> to vector<2x16x128xf32>
    %6 = vector.extract_strided_slice %3 {offsets = [0, 128], sizes = [32, 128], strides = [1, 1]} : vector<32x384xf32> to vector<32x128xf32>
    %7 = vector.shape_cast %6 : vector<32x128xf32> to vector<2x16x128xf32>
    %8 = vector.extract_strided_slice %3 {offsets = [0, 256], sizes = [32, 128], strides = [1, 1]} : vector<32x384xf32> to vector<32x128xf32>
    %9 = vector.shape_cast %8 : vector<32x128xf32> to vector<2x16x128xf32>
    %10 = arith.mulf %5, %5 : vector<2x16x128xf32>
    %cst_4 = arith.constant dense<0.000000e+00> : vector<2x128xf32>
    %11 = vector.multi_reduction <add>, %10, %cst_4 [1] : vector<2x16x128xf32> to vector<2x128xf32>
    %12 = vector.shape_cast %11 : vector<2x128xf32> to vector<2x1x128xf32>
    %cst_5 = arith.constant 1.000000e-24 : f32
    %13 = vector.broadcast %cst_5 : f32 to vector<2x1x128xf32>
    %14 = arith.maximumf %12, %13 : vector<2x1x128xf32>
    %15 = math.rsqrt %14 : vector<2x1x128xf32>
    %16 = arith.mulf %7, %7 : vector<2x16x128xf32>
    %cst_6 = arith.constant dense<0.000000e+00> : vector<2x128xf32>
    %17 = vector.multi_reduction <add>, %16, %cst_6 [1] : vector<2x16x128xf32> to vector<2x128xf32>
    %18 = vector.shape_cast %17 : vector<2x128xf32> to vector<2x1x128xf32>
    %cst_7 = arith.constant 1.000000e-24 : f32
    %19 = vector.broadcast %cst_7 : f32 to vector<2x1x128xf32>
    %20 = arith.maximumf %18, %19 : vector<2x1x128xf32>
    %21 = math.rsqrt %20 : vector<2x1x128xf32>
    %cst_8 = arith.constant 8.000000e-01 : f32
    %22 = vector.broadcast %cst_8 : f32 to vector<2x1x128xf32>
    %23 = arith.mulf %15, %22 : vector<2x1x128xf32>
    %24 = vector.broadcast %23 : vector<2x1x128xf32> to vector<2x16x128xf32>
    %25 = arith.mulf %5, %24 : vector<2x16x128xf32>
    %26 = arith.truncf %25 : vector<2x16x128xf32> to vector<2x16x128xbf16>
    %c0_9 = arith.constant 0 : index
    %c0_10 = arith.constant 0 : index
    %c0_11 = arith.constant 0 : index
    %27 = vector.load %arg7[%c0_9, %c0_10, %c0_11] : memref<2x16x128xbf16, #tpu.memory_space<vmem>>, vector<2x16x128xbf16>
    tpu.vector_store %arg7[%c0_9, %c0_10, %c0_11], %26 {strides = array<i32>} : memref<2x16x128xbf16, #tpu.memory_space<vmem>>, vector<2x16x128xbf16>,
    %28 = vector.broadcast %21 : vector<2x1x128xf32> to vector<2x16x128xf32>
    %29 = arith.mulf %7, %28 : vector<2x16x128xf32>
    %30 = arith.truncf %29 : vector<2x16x128xf32> to vector<2x16x128xbf16>
    %c0_12 = arith.constant 0 : index
    %c0_13 = arith.constant 0 : index
    %c0_14 = arith.constant 0 : index
    %31 = vector.load %arg8[%c0_12, %c0_13, %c0_14] : memref<2x16x128xbf16, #tpu.memory_space<vmem>>, vector<2x16x128xbf16>
    tpu.vector_store %arg8[%c0_12, %c0_13, %c0_14], %30 {strides = array<i32>} : memref<2x16x128xbf16, #tpu.memory_space<vmem>>, vector<2x16x128xbf16>,
    %32 = arith.truncf %9 : vector<2x16x128xf32> to vector<2x16x128xbf16>
    %c0_15 = arith.constant 0 : index
    %c0_16 = arith.constant 0 : index
    %c0_17 = arith.constant 0 : index
    %33 = vector.load %arg9[%c0_15, %c0_16, %c0_17] : memref<2x16x128xbf16, #tpu.memory_space<vmem>>, vector<2x16x128xbf16>
    tpu.vector_store %arg9[%c0_15, %c0_16, %c0_17], %32 {strides = array<i32>} : memref<2x16x128xbf16, #tpu.memory_space<vmem>>, vector<2x16x128xbf16>,
    %c0_18 = arith.constant 0 : index
    %c0_19 = arith.constant 0 : index
    %34 = vector.load %arg5[%c0_18, %c0_19] : memref<128x128xf32, #tpu.memory_space<vmem>>, vector<128x128xf32>
    %c0_i32 = arith.constant 0 : i32
    %c2_i32 = arith.constant 2 : i32
    %35 = arith.addi %c0_i32, %c2_i32 : i32
    %c1_i32 = arith.constant 1 : i32
    scf.for %arg11 = %c0_i32 to %35 step %c1_i32  : i32 {
      %c1_i32_32 = arith.constant 1 : i32
      %45 = arith.muli %arg11, %c1_i32_32 : i32
      %c0_i32_33 = arith.constant 0 : i32
      %46 = arith.addi %c0_i32_33, %45 : i32
      %47 = arith.index_cast %46 : i32 to index
      %c0_34 = arith.constant 0 : index
      %c0_35 = arith.constant 0 : index
      %48 = vector.load %arg7[%47, %c0_34, %c0_35] : memref<2x16x128xbf16, #tpu.memory_space<vmem>>, vector<1x16x128xbf16>
      %49 = vector.shape_cast %48 : vector<1x16x128xbf16> to vector<16x128xbf16>
      %50 = arith.index_cast %46 : i32 to index
      %c0_36 = arith.constant 0 : index
      %c0_37 = arith.constant 0 : index
      %51 = vector.load %arg8[%50, %c0_36, %c0_37] : memref<2x16x128xbf16, #tpu.memory_space<vmem>>, vector<1x16x128xbf16>
      %52 = vector.shape_cast %51 : vector<1x16x128xbf16> to vector<16x128xbf16>
      %cst_38 = arith.constant dense<0.000000e+00> : vector<128x128xf32>
      %53 = tpu.matmul %49, %52, %cst_38 {dimension_numbers = #tpu.dot_dimension_numbers<[0], [0], [1], [1], [0, 1, 1, 1], [], []>} : vector<16x128xbf16>, vector<16x128xbf16>, vector<128x128xf32> -> vector<128x128xf32>
      %54 = arith.addf %53, %34 : vector<128x128xf32>
      %cst_39 = arith.constant dense<0xFF800000> : vector<128xf32>
      %55 = vector.multi_reduction <maximumf>, %54, %cst_39 [1] : vector<128x128xf32> to vector<128xf32>
      %56 = vector.shape_cast %55 : vector<128xf32> to vector<128x1xf32>
      %57 = vector.broadcast %56 : vector<128x1xf32> to vector<128x128xf32>
      %58 = arith.subf %54, %57 : vector<128x128xf32>
      %59 = math.exp %58 : vector<128x128xf32>
      %cst_40 = arith.constant dense<0.000000e+00> : vector<128xf32>
      %60 = vector.multi_reduction <add>, %59, %cst_40 [1] : vector<128x128xf32> to vector<128xf32>
      %61 = vector.shape_cast %60 : vector<128xf32> to vector<128x1xf32>
      %62 = tpu.reciprocal %61 {approx = true} : vector<128x1xf32> -> vector<128x1xf32>
      %63 = vector.broadcast %62 : vector<128x1xf32> to vector<128x128xf32>
      %64 = arith.mulf %59, %63 : vector<128x128xf32>
      %65 = arith.truncf %64 : vector<128x128xf32> to vector<128x128xbf16>
      %66 = arith.index_cast %46 : i32 to index
      %c0_41 = arith.constant 0 : index
      %c0_42 = arith.constant 0 : index
      %67 = vector.load %arg9[%66, %c0_41, %c0_42] : memref<2x16x128xbf16, #tpu.memory_space<vmem>>, vector<1x16x128xbf16>
      %68 = vector.shape_cast %67 : vector<1x16x128xbf16> to vector<16x128xbf16>
      %cst_43 = arith.constant dense<0.000000e+00> : vector<16x128xf32>
      %69 = tpu.matmul %68, %65, %cst_43 {dimension_numbers = #tpu.dot_dimension_numbers<[1], [1], [0], [0], [0, 0, 1, 0], [], []>} : vector<16x128xbf16>, vector<128x128xbf16>, vector<16x128xf32> -> vector<16x128xf32>
      %70 = arith.truncf %69 : vector<16x128xf32> to vector<16x128xbf16>
      %71 = arith.index_cast %46 : i32 to index
      %c0_44 = arith.constant 0 : index
      %c0_45 = arith.constant 0 : index
      %72 = vector.load %arg10[%71, %c0_44, %c0_45] : memref<2x16x128xbf16, #tpu.memory_space<vmem>>, vector<1x16x128xbf16>
      %73 = vector.shape_cast %72 : vector<1x16x128xbf16> to vector<16x128xbf16>
      %74 = vector.shape_cast %70 : vector<16x128xbf16> to vector<1x16x128xbf16>
      tpu.vector_store %arg10[%71, %c0_44, %c0_45], %74 {strides = array<i32>} : memref<2x16x128xbf16, #tpu.memory_space<vmem>>, vector<1x16x128xbf16>,
    }
    %c2_i32_20 = arith.constant 2 : i32
    %c0_21 = arith.constant 0 : index
    %c0_22 = arith.constant 0 : index
    %c0_23 = arith.constant 0 : index
    %36 = vector.load %arg10[%c0_21, %c0_22, %c0_23] : memref<2x16x128xbf16, #tpu.memory_space<vmem>>, vector<2x16x128xbf16>
    %37 = vector.shape_cast %36 : vector<2x16x128xbf16> to vector<32x128xbf16>
    %c0_24 = arith.constant 0 : index
    %c0_25 = arith.constant 0 : index
    %38 = vector.load %arg3[%c0_24, %c0_25] : memref<128x128xbf16, #tpu.memory_space<vmem>>, vector<128x128xbf16>
    %cst_26 = arith.constant dense<0.000000e+00> : vector<32x128xf32>
    %39 = tpu.matmul %37, %38, %cst_26 {dimension_numbers = #tpu.dot_dimension_numbers<[1], [0], [0], [1], [0, 0, 1, 1], [], []>} : vector<32x128xbf16>, vector<128x128xbf16>, vector<32x128xf32> -> vector<32x128xf32>
    %c0_27 = arith.constant 0 : index
    %c0_28 = arith.constant 0 : index
    %40 = vector.load %arg4[%c0_27, %c0_28] : memref<1x128xf32, #tpu.memory_space<vmem>>, vector<1x128xf32>
    %41 = vector.broadcast %40 : vector<1x128xf32> to vector<32x128xf32>
    %42 = arith.addf %39, %41 : vector<32x128xf32>
    %43 = vector.shape_cast %42 : vector<32x128xf32> to vector<2x16x128xf32>
    %c0_29 = arith.constant 0 : index
    %c0_30 = arith.constant 0 : index
    %c0_31 = arith.constant 0 : index
    %44 = vector.load %arg6[%c0_29, %c0_30, %c0_31] : memref<2x16x128xf32, #tpu.memory_space<vmem>>, vector<2x16x128xf32>
    tpu.vector_store %arg6[%c0_29, %c0_30, %c0_31], %43 {strides = array<i32>} : memref<2x16x128xf32, #tpu.memory_space<vmem>>, vector<2x16x128xf32>,
    return
  }
  func.func @transform_0(%arg0: i32) -> (i32, i32, i32) {
    %c0_i32 = arith.constant 0 : i32
    %c0_i32_0 = arith.constant 0 : i32
    %c0_i32_1 = arith.constant 0 : i32
    return %arg0, %c0_i32, %c0_i32_0 : i32, i32, i32
  }
  func.func @transform_1(%arg0: i32) -> (i32, i32) {
    %c0_i32 = arith.constant 0 : i32
    %c0_i32_0 = arith.constant 0 : i32
    %c0_i32_1 = arith.constant 0 : i32
    return %c0_i32, %c0_i32_0 : i32, i32
  }
  func.func @transform_2(%arg0: i32) -> (i32, i32) {
    %c0_i32 = arith.constant 0 : i32
    %c0_i32_0 = arith.constant 0 : i32
    %c0_i32_1 = arith.constant 0 : i32
    return %c0_i32, %c0_i32_0 : i32, i32
  }
  func.func @transform_3(%arg0: i32) -> (i32, i32) {
    %c0_i32 = arith.constant 0 : i32
    %c0_i32_0 = arith.constant 0 : i32
    %c0_i32_1 = arith.constant 0 : i32
    return %c0_i32, %c0_i32_0 : i32, i32
  }
  func.func @transform_4(%arg0: i32) -> (i32, i32) {
    %c0_i32 = arith.constant 0 : i32
    %c0_i32_0 = arith.constant 0 : i32
    %c0_i32_1 = arith.constant 0 : i32
    return %c0_i32, %c0_i32_0 : i32, i32
  }
  func.func @transform_5(%arg0: i32) -> (i32, i32, i32) {
    %c0_i32 = arith.constant 0 : i32
    %c0_i32_0 = arith.constant 0 : i32
    %c0_i32_1 = arith.constant 0 : i32
    return %arg0, %c0_i32, %c0_i32_0 : i32, i32, i32
  }
}

</mosaic_0001>

<bundles_post_ra>
// kernel: tpu_custom_call.1
= control target key start
LH: loop header
LB: loop body
LE: loop exit
PB: predicated region body
PF: predicated region fallthrough
CT: control target
= control target key end

     0   :  { %10 = vsyncpa [#allocation7], 0  ;;  %s2293_s0 = inlined_call_operand.hbm [shape: bf16[4,16,128], index: 0, kind: input, shape index: {}]   ;;  %s2294_s1 = inlined_call_operand.hbm [shape: bf16[128,384], index: 1, kind: input, shape index: {}]   ;;  %s2295_s2 = inlined_call_operand.hbm [shape: bf16[128,128], index: 2, kind: input, shape index: {}]   ;;  %s2296_s3 = inlined_call_operand.vmem [shape: f32[1,128], index: 3, kind: input, shape index: {}]   ;;  %s2297_s4 = inlined_call_operand.hbm [shape: f32[128,128], index: 4, kind: input, shape index: {}]   ;;  %s2298_s5 = inlined_call_operand.hbm [shape: f32[4,16,128], index: 5, kind: output, shape index: {}]  }
   0x1   :  { %12 = vsyncpa [#allocation7 + $0x1], 0 }
   0x2   :  { %13 = vsyncpa [#allocation10], 0 }
   0x3   :  { %14 = vsyncpa [#allocation13], 0 }
   0x4   :  { %15 = vsyncpa [#allocation8], 0 }
   0x5   :  { %17 = vsyncpa [#allocation8 + $0x1], 0  ;;  %s1905_s18 = smov 0   ;;  %s1907_s19 = smov 0  }
   0x6   :  { %s1909_s20 = smov 0   ;;  %s1911_s21 = smov 0  }
   0x7 LB: > { %s1926_s22 = sadd.s32 4294967295, %s1858_s21   ;;  %s1200_s23 = sadd.s32 4294967294, %s1858_s21   ;;  %s1858_s21 = sphi %s1911_s21, %s2311_s21   ;;  %s1854_s20 = sphi %s1909_s20, %s2310_s20   ;;  %s1850_s19 = sphi %s1907_s19, %s2309_s19   ;;  %s1846_s18 = sphi %s1905_s18, %s2308_s18  }
   0x8   : > { %p43_p0 = scmp.ne.s32.totalorder %s1850_s19, %s1846_s18  ;;  %p44_p1 = scmp.eq.s32.totalorder %s1926_s22, 0 }
   0x9   : > { %p151_p2 = scmp.eq.s32.totalorder %s1926_s22, 1  ;;  %p157_p3 = scmp.eq.s32.totalorder %s1200_s23, 1 }
   0xa   : > { %p1935_p4 = por %p44_p1, %p43_p0  ;;  %p1201_p5 = scmp.ge.s32.totalorder %s1858_s21, 1 }
   0xb   : > { %p1940_p6 = por %p157_p3, %p43_p0  ;;  %p164_p7 = scmp.lt.s32.totalorder %s1858_s21, 3 }
   0xc   : > { %s175_s28 = sshll.u32 %s2294_s1, 4  ;;  %s1864_s30 = smov [#allocation9]   ;;  %s176_s28 = int_to_ptr.hbm [resolvable:$true] %s175_s28 }
   0xd   : > { %p1948_p8 = pnand %p1201_p5, %p164_p7  ;;  %s177_s6 = sshll.u32 %s1864_s30, 4  ;;  %s178_s6 = int_to_ptr.vmem [resolvable:$true] %s177_s6 }
   0xe   : > { %s189_s10 = sshll.u32 %s2295_s2, 4  ;;  %s1865_s11 = smov 192   ;;  %s190_s10 = int_to_ptr.hbm [resolvable:$true] %s189_s10 }
   0xf   : > { %p1509_p9 = pneg %p1948_p8  ;;  %s1866_s12 = smov 12  }
  0x10   : > { %s1867_s13 = smov [#allocation11]   ;;  %s2299_s15 = smov 64  }
  0x11   : > { %p1956_p10 = pnand %p1509_p9, %p44_p1  ;;  %s191_s14 = sshll.u32 %s1867_s13, 4  ;;  %s192_s14 = int_to_ptr.vmem [resolvable:$true] %s191_s14 }
  0x12   : > { %s1869_s16 = smov 4   ;;  %s206_s26 = sshll.u32 %s2297_s4, 4  ;;  %s207_s26 = int_to_ptr.hbm [resolvable:$true] %s206_s26 }
  0x13   : > { %1512 = dma.hbm_to_vmem [thread:$0]  (!%p1956_p10), %s176_s28, 3072, %s178_s6, [#allocation10], %s1865_s11, %s1865_s11, %s1866_s12  }
  0x14   : > { %1515 = dma.hbm_to_vmem [thread:$0]  (!%p1956_p10), %s190_s10, 1024, %s192_s14, [#allocation10], %s2299_s15, %s2299_s15, %s1869_s16  }
  0x15   : > { %s1870_s27 = smov [#allocation12]   ;;  %s1871_s30 = smov 128  }
  0x16   : > { %s208_s28 = sshll.u32 %s1870_s27, 4  ;;  %s1872_s6 = smov 8   ;;  %s209_s28 = int_to_ptr.vmem [resolvable:$true] %s208_s28 }
  0x17   : > { %1518 = dma.hbm_to_vmem [thread:$0]  (!%p1956_p10), %s207_s26, 2048, %s209_s28, [#allocation13], %s1871_s30, %s1871_s30, %s1872_s6  }
  0x18   : > { %s1977_s8 = sadd.s32 1, %s1858_s21   ;;  %s30_s10 = sadd.s32 1, %s1854_s20 }
  0x19   : > { %s27_s9 = ssub.s32 %s1858_s21, %s1977_s8  ;;  %p37_p13 = scmp.ne.s32.totalorder %s1854_s20, %s1850_s19 }
  0x1a   : > { %p28_p12 = scmp.eq.s32.totalorder %s27_s9, 0  ;;  %p38_p0 = scmp.eq.s32.totalorder %s1858_s21, 0 }
  0x1b   : > { %p1990_p3 = por %p151_p2, %p37_p13  ;;  %p1530_p5 = scmp.lt.s32.totalorder %s1858_s21, 2 }
  0x1c   : > { %s1986_s11 = scalar_select %p28_p12, %s1854_s20, %s30_s10  }
  0x1d   : > { %s222_s13 = sand.u32 1, %s1854_s20   ;;  %s1392_s14 = sshll.u32 %s1858_s21, 4 }
  0x1e   : > { %p39_p7 = por %p38_p0, %p37_p13  ;;  %s1206_s7 = sshll.u32 %s222_s13, 4 }
  0x1f   : > { %s232_s26 = scalar_lea.hbm %s2293_s0, %s1392_s14  ;;  %s226_s28 = scalar_lea.vmem [#allocation6], %s1206_s7 }
  0x20   : > { %s233_s27 = sshll.u32 %s232_s26, 4  ;;  %s235_s30 = sshll.u32 %s226_s28, 4  ;;  %s234_s27 = int_to_ptr.hbm [resolvable:$true] %s233_s27  ;;  %s236_s30 = int_to_ptr.vmem [resolvable:$true] %s235_s30 }
  0x21   : > { %p2000_p9 = pnand %p1530_p5, %p39_p7  ;;  %s223_s9 = scalar_lea.sflag [#allocation7], %s222_s13 }
  0x22   : > { %s1750_s10 = sshra.s32 %s234_s27, 4  ;;  %s1757_s7 = scalar_lea.hbm %s2293_s0, 32  ;;  %s1751_s10 = int_to_ptr.hbm [resolvable:$true] %s1750_s10 }
  0x23   : > { %s1752_s15 = scalar_lea.hbm %s1751_s10, 16  ;;  %p1754_p10 = pneg %p2000_p9 }
  0x24   : > { %p1753_p2 = scmp.ne.s32.totalorder %s1751_s10, %s1752_s15  ;;  %p1758_p0 = scmp.lt.s32.totalorder %s1751_s10, %s2293_s0 }
  0x25   : > { %p1759_p5 = scmp.lt.s32.totalorder %s1757_s7, %s1752_s15 }
  0x26   : > { %p1755_p12 = pnand %p1754_p10, %p1753_p2 }
  0x27   : > { %p1760_p7 = por %p1759_p5, %p1758_p0 }
  0x28   : > { %p1756_p13 = pneg %p1755_p12 }
  0x2a   : > { %p1761_p11 = pnand %p1760_p7, %p1756_p13 }
  0x2c   : > { %1764 = shalt.err (!%p1761_p11)
}
  0x2d   : > { %s2306_s13 = smov 64   ;;  %247 = sbr.rel (%p1948_p8) target bundleno = 1319 (0x527), region = 40 }
  0x2e   : > { %1522 = dma.hbm_to_vmem [thread:$0]  (!%p2000_p9), %s234_s27, 256, %s236_s30, %s223_s9, %s2306_s13, %s2306_s13, %s1869_s16  }
  0x2f   : > { %s2020_s28 = sand.u32 (!%p1948_p8), 1, %s1850_s19  }
  0x30   : > { %s1211_s10 = sshll.u32 (!%p1948_p8), %s2020_s28, 4  ;;  %s250_s15 = scalar_lea.sflag (!%p1948_p8), [#allocation7], %s2020_s28 }
  0x31   : > { %s2024_s14 = scalar_lea.vmem (!%p1948_p8), [#allocation6], %s1211_s10 }
  0x32   : > { %1829 = dma.done.wait (%p1935_p4), %s250_s15, 256  }
  0x33   : > { %1831 = vsyncadd (%p1935_p4), %s250_s15, 4294967040 }
  0x34   : > { %1833 = dma.done.wait (%p44_p1), [#allocation10], 4096  }
  0x35   : > { %1835 = vsyncadd (%p44_p1), [#allocation10], 4294963200 }
  0x36   : > { %1837 = dma.done.wait (%p44_p1), [#allocation13], 2048  }
  0x37   : > { %1839 = vsyncadd (%p44_p1), [#allocation13], 4294965248  ;;  %s1215_s29 = sshll.u32 %s2020_s28, 5  ;;  %v2039_v0 = vld [vmem:[#allocation12] sm:$0xff]  ;;  %v2041_v1 = vld [vmem:[#allocation12 + $0x8] sm:$0xff]  ;;  %s2117_s16 = smov 0  }
  0x38   : > { %v2043_v2 = vld [vmem:[#allocation12 + $0x10] sm:$0xff]  ;;  %v2045_v3 = vld [vmem:[#allocation12 + $0x18] sm:$0xff]  ;;  %v2047_v4 = vld [vmem:[#allocation12 + $0x20] sm:$0xff]  ;;  %s2115_s24 = scalar_lea.vmem [#allocation14], %s1215_s29 }
  0x39   : > { %v2049_v5 = vld [vmem:[#allocation12 + $0x28] sm:$0xff]  ;;  %v2051_v6 = vld [vmem:[#allocation12 + $0x30] sm:$0xff]  ;;  %v2053_v7 = vld [vmem:[#allocation12 + $0x38] sm:$0xff] }
  0x3a   : > { %v2055_v8 = vld [vmem:[#allocation12 + $0x40] sm:$0xff]  ;;  %v2057_v9 = vld [vmem:[#allocation12 + $0x48] sm:$0xff]  ;;  %v2059_v10 = vld [vmem:[#allocation12 + $0x50] sm:$0xff] }
  0x3b   : > { %v2061_v11 = vld [vmem:[#allocation12 + $0x58] sm:$0xff]  ;;  %v2063_v12 = vld [vmem:[#allocation12 + $0x60] sm:$0xff]  ;;  %v2065_v13 = vld [vmem:[#allocation12 + $0x68] sm:$0xff] }
  0x3c   : > { %v2067_v14 = vld [vmem:[#allocation12 + $0x70] sm:$0xff]  ;;  %v2069_v15 = vld [vmem:[#allocation12 + $0x78] sm:$0xff]  ;;  %v1310_v16 = vld [vmem:[#allocation9 + $0xa8] sm:$0xf] }
  0x3d   : > { %v1417_v17 = vld [vmem:[#allocation9 + $0xb0] sm:$0xf0]  ;;  %v1416_v19 = vld [vmem:[#allocation9 + $0xac] sm:$0xf]  ;;  %v1312_v20 = vld [vmem:[#allocation9 + $0xb4] sm:$0xf0] }
  0x3e   : > { %v1311_v18 = vor.u32 %v1417_v17, %v1310_v16  ;;  %v1298_v21 = vld [vmem:[#allocation9 + $0x90] sm:$0xf]  ;;  %v1315_v22 = vor.u32 %v1416_v19, %v1312_v20  ;;  %v1414_v23 = vld [vmem:[#allocation9 + $0x98] sm:$0xf0]  ;;  %v1413_v24 = vld [vmem:[#allocation9 + $0x94] sm:$0xf] }
  0x3f   : > { %v1300_v25 = vld [vmem:[#allocation9 + $0x9c] sm:$0xf0]  ;;  %v1299_v26 = vor.u32 %v1414_v23, %v1298_v21  ;;  %v1286_v28 = vld [vmem:[#allocation9 + $0x78] sm:$0xf]  ;;  %v1411_v29 = vld [vmem:[#allocation9 + $0x80] sm:$0xf0] }
  0x40   : > { %475 = vmatpush.bf16.msra.mxu0 %v1311_v18  ;;  %1476 = vmatpush.bf16.msra.mxu3 %v1311_v18  ;;  %v1303_v27 = vor.u32 %v1413_v24, %v1300_v25  ;;  %v1410_v30 = vld [vmem:[#allocation9 + $0x7c] sm:$0xf]  ;;  %v1288_v31 = vld [vmem:[#allocation9 + $0x84] sm:$0xf0]  ;;  %v1287_v32 = vor.u32 %v1411_v29, %v1286_v28  ;;  %v1274_v34 = vld [vmem:[#allocation9 + $0x60] sm:$0xf] }
  0x41   : > { %494 = vmatpush.bf16.msra.mxu1 %v1315_v22  ;;  %v1291_v33 = vor.u32 %v1410_v30, %v1288_v31  ;;  %v1408_v35 = vld [vmem:[#allocation9 + $0x68] sm:$0xf0]  ;;  %v1407_v36 = vld [vmem:[#allocation9 + $0x64] sm:$0xf]  ;;  %v1276_v37 = vld [vmem:[#allocation9 + $0x6c] sm:$0xf0] }
  0x42   : > { %v1318_v38 = vld [vmem:[#allocation9 + $0xb0] sm:$0xf]  ;;  %v1418_v39 = vld [vmem:[#allocation9 + $0xb8] sm:$0xf0]  ;;  %v1275_v40 = vor.u32 %v1408_v35, %v1274_v34  ;;  %v1306_v42 = vld [vmem:[#allocation9 + $0x98] sm:$0xf]  ;;  %v1279_v43 = vor.u32 %v1407_v36, %v1276_v37 }
  0x43   : > { %v1319_v41 = vor.u32 %v1418_v39, %v1318_v38  ;;  %v1262_v44 = vld [vmem:[#allocation9 + $0x48] sm:$0xf]  ;;  %v1405_v45 = vld [vmem:[#allocation9 + $0x50] sm:$0xf0]  ;;  %v1415_v46 = vld [vmem:[#allocation9 + $0xa0] sm:$0xf0] }
  0x44   : > { %476 = vmatpush.bf16.msra.mxu0 %v1299_v26  ;;  %1477 = vmatpush.bf16.msra.mxu3 %v1299_v26  ;;  %v1404_v47 = vld [vmem:[#allocation9 + $0x4c] sm:$0xf]  ;;  %v1264_v48 = vld [vmem:[#allocation9 + $0x54] sm:$0xf0]  ;;  %v1307_v49 = vor.u32 %v1415_v46, %v1306_v42  ;;  %v1294_v50 = vld [vmem:[#allocation9 + $0x80] sm:$0xf]  ;;  %v1263_v52 = vor.u32 %v1405_v45, %v1262_v44 }
  0x45   : > { %495 = vmatpush.bf16.msra.mxu1 %v1303_v27  ;;  %513 = vmatpush.bf16.msra.mxu2 %v1319_v41  ;;  %v1412_v51 = vld [vmem:[#allocation9 + $0x88] sm:$0xf0]  ;;  %v1267_v53 = vor.u32 %v1404_v47, %v1264_v48  ;;  %v1250_v54 = vld [vmem:[#allocation9 + $0x30] sm:$0xf]  ;;  %v1402_v55 = vld [vmem:[#allocation9 + $0x38] sm:$0xf0] }
  0x46   : > { %v1401_v56 = vld [vmem:[#allocation9 + $0x34] sm:$0xf]  ;;  %v1252_v57 = vld [vmem:[#allocation9 + $0x3c] sm:$0xf0]  ;;  %v1295_v58 = vor.u32 %v1412_v51, %v1294_v50  ;;  %v1282_v59 = vld [vmem:[#allocation9 + $0x68] sm:$0xf]  ;;  %v1251_v61 = vor.u32 %v1402_v55, %v1250_v54 }
  0x47   : > { %v1409_v60 = vld [vmem:[#allocation9 + $0x70] sm:$0xf0]  ;;  %v1255_v62 = vor.u32 %v1401_v56, %v1252_v57  ;;  %v1238_v63 = vld [vmem:[#allocation9 + $0x18] sm:$0xf]  ;;  %v1399_v16 = vld [vmem:[#allocation9 + $0x20] sm:$0xf0] }
  0x48   : > { %477 = vmatpush.bf16.msra.mxu0 %v1287_v32  ;;  %1478 = vmatpush.bf16.msra.mxu3 %v1287_v32  ;;  %v1398_v17 = vld [vmem:[#allocation9 + $0x1c] sm:$0xf]  ;;  %v1240_v18 = vld [vmem:[#allocation9 + $0x24] sm:$0xf0]  ;;  %v1283_v19 = vor.u32 %v1409_v60, %v1282_v59  ;;  %v1270_v20 = vld [vmem:[#allocation9 + $0x50] sm:$0xf]  ;;  %v1239_v22 = vor.u32 %v1399_v16, %v1238_v63 }
  0x49   : > { %496 = vmatpush.bf16.msra.mxu1 %v1291_v33  ;;  %514 = vmatpush.bf16.msra.mxu2 %v1307_v49  ;;  %v1406_v21 = vld [vmem:[#allocation9 + $0x58] sm:$0xf0]  ;;  %v1243_v23 = vor.u32 %v1398_v17, %v1240_v18  ;;  %v1226_v24 = vld [vmem:[#allocation9] sm:$0xf]  ;;  %v1396_v25 = vld [vmem:[#allocation9 + $0x8] sm:$0xf0] }
  0x4a   : > { %v1395_v26 = vld [vmem:[#allocation9 + $0x4] sm:$0xf]  ;;  %v1228_v27 = vld [vmem:[#allocation9 + $0xc] sm:$0xf0]  ;;  %v1271_v28 = vor.u32 %v1406_v21, %v1270_v20  ;;  %v1258_v29 = vld [vmem:[#allocation9 + $0x38] sm:$0xf]  ;;  %v1227_v31 = vor.u32 %v1396_v25, %v1226_v24 }
  0x4b   : > { %v1403_v30 = vld [vmem:[#allocation9 + $0x40] sm:$0xf0]  ;;  %v1231_v32 = vor.u32 %v1395_v26, %v1228_v27  ;;  %v1394_v35 = vld [vmem:[%s2024_s14 + $0x8] sm:$0xff]  ;;  %v1246_v36 = vld [vmem:[#allocation9 + $0x20] sm:$0xf] }
  0x4c   : > { %478 = vmatpush.bf16.msra.mxu0 %v1275_v40  ;;  %1479 = vmatpush.bf16.msra.mxu3 %v1275_v40  ;;  %v1393_v33 = vld [vmem:[%s2024_s14] sm:$0xff]  ;;  %v1259_v34 = vor.u32 %v1403_v30, %v1258_v29  ;;  %v1400_v37 = vld [vmem:[#allocation9 + $0x28] sm:$0xf0]  ;;  %v1234_v39 = vld [vmem:[#allocation9 + $0x8] sm:$0xf] }
  0x4d   : > { %497 = vmatpush.bf16.msra.mxu1 %v1279_v43  ;;  %515 = vmatpush.bf16.msra.mxu2 %v1295_v58  ;;  %v1247_v38 = vor.u32 %v1400_v37, %v1246_v36  ;;  %v1397_v40 = vld [vmem:[#allocation9 + $0x10] sm:$0xf0] }
  0x4e   : > { %v1235_v41 = vor.u32 %v1397_v40, %v1234_v39 }
  0x50   : > { %479 = vmatpush.bf16.msra.mxu0 %v1263_v52  ;;  %1480 = vmatpush.bf16.msra.mxu3 %v1263_v52 }
  0x51   : > { %498 = vmatpush.bf16.msra.mxu1 %v1267_v53  ;;  %516 = vmatpush.bf16.msra.mxu2 %v1283_v19 }
  0x54   : > { %480 = vmatpush.bf16.msra.mxu0 %v1251_v61  ;;  %1481 = vmatpush.bf16.msra.mxu3 %v1251_v61 }
  0x55   : > { %499 = vmatpush.bf16.msra.mxu1 %v1255_v62  ;;  %517 = vmatpush.bf16.msra.mxu2 %v1271_v28 }
  0x58   : > { %481 = vmatpush.bf16.msra.mxu0 %v1239_v22  ;;  %1482 = vmatpush.bf16.msra.mxu3 %v1239_v22 }
  0x59   : > { %500 = vmatpush.bf16.msra.mxu1 %v1243_v23  ;;  %518 = vmatpush.bf16.msra.mxu2 %v1259_v34 }
  0x5c   : > { %482 = vmatpush.bf16.msra.mxu0 %v1227_v31  ;;  %1483 = vmatpush.bf16.msra.mxu3 %v1227_v31 }
  0x5d   : > { %501 = vmatpush.bf16.msra.mxu1 %v1231_v32  ;;  %519 = vmatpush.bf16.msra.mxu2 %v1247_v38 }
  0x5f   : > { %483 = vmatmul.bf16.vlgmr.msra.gmra.mxu0 %v1393_v33  ;;  %488 = vmatmul.bf16.vlgmr.msra.gmra.mxu3 %v1394_v35 }
  0x60   : > { %502 = vmatmul.bf16.vlgmr.msra.gmra.mxu1 %v1393_v33 }
  0x61   : > { %520 = vmatpush.bf16.msra.mxu2 %v1235_v41 }
  0x64   : > { %521 = vmatmul.bf16.vlgmr.msra.gmra.mxu2 %v1393_v33 }
  0x70   : > { %507 = vmatmul.bf16.gmra.mxu1 %v1394_v35 }
  0x74   : > { %526 = vmatmul.bf16.gmra.mxu2 %v1394_v35 }
  0xdc   : > { %v2073_v42 = vpop.f32.mrf.mxu0 }
  0xdd   : > { %v2075_v43 = vpop.f32.mrf.mxu1  ;;  %v532_v45 = vmul.f32 %v2073_v42, %v2073_v42 }
  0xde   : > { %v572_v49 = vmul.f32 %v2075_v43, %v2075_v43 }
  0xe2   : > { %v2077_v44 = vpop.f32.mrf.mxu3 }
  0xe3   : > { %v534_v53 = vmul.f32 %v2077_v44, %v2077_v44 }
  0xe4   : > { %v2081_v46 = vpop.f32.mrf.mxu0 }
  0xe5   : > { %v533_v47 = vmul.f32 %v2081_v46, %v2081_v46  ;;  %v2085_v48 = vpop.f32.mrf.mxu1 }
  0xe6   : > { %v573_v50 = vmul.f32 %v2085_v48, %v2085_v48 }
  0xe7   : > { %v536_v51 = vadd.f32 %v533_v47, %v532_v45  ;;  %v522_v60 = vpop.f32.mrf.mxu2 }
  0xe8   : > { %v576_v52 = vadd.f32 %v573_v50, %v572_v49 }
  0xe9   : > { %v537_v54 = vrot.slane %v536_v51, 4 }
  0xea   : > { %v577_v55 = vrot.slane %v576_v52, 4  ;;  %v2093_v56 = vpop.f32.mrf.mxu3 }
  0xeb   : > { %v538_v57 = vadd.f32 %v537_v54, %v536_v51  ;;  %v535_v58 = vmul.f32 %v2093_v56, %v2093_v56 }
  0xec   : > { %v578_v59 = vadd.f32 %v577_v55, %v576_v52 }
  0xed   : > { %v539_v61 = vrot.slane %v538_v57, 2  ;;  %v543_v62 = vadd.f32 %v535_v58, %v534_v53  ;;  %v2097_v63 = vpop.f32.mrf.mxu1 }
  0xee   : > { %v579_v16 = vrot.slane %v578_v59, 2  ;;  %v574_v32 = vmul.f32 %v2097_v63, %v2097_v63 }
  0xef   : > { %v540_v17 = vadd.f32 %v539_v61, %v538_v57  ;;  %v544_v18 = vrot.slane %v543_v62, 4  ;;  %v524_v26 = vpop.f32.mrf.mxu2 }
  0xf0   : > { %v580_v19 = vadd.f32 %v579_v16, %v578_v59  ;;  %v1461_v30 = vpack.c.bf16 %v524_v26, %v522_v60 }
  0xf1   : > { %v541_v20 = vrot.slane %v540_v17, 1  ;;  %v545_v21 = vadd.f32 %v544_v18, %v543_v62 }
  0xf2   : > { %v581_v22 = vrot.slane %v580_v19, 1  ;;  %1462 = vst [vmem:[#allocation4] sm:$0xff] %v1461_v30  }
  0xf3   : > { %v542_v23 = vadd.f32 %v541_v20, %v540_v17  ;;  %v546_v24 = vrot.slane %v545_v21, 2 }
  0xf4   : > { %v582_v25 = vadd.f32 %v581_v22, %v580_v19 }
  0xf5   : > { %v550_v27 = vmax.f32 %v542_v23, 1e-24  ;;  %v547_v28 = vadd.f32 %v546_v24, %v545_v21  ;;  %v2099_v29 = vpop.f32.mrf.mxu1 }
  0xf6   : > { %v590_v31 = vmax.f32 %v582_v25, 1e-24  ;;  %v575_v33 = vmul.f32 %v2099_v29, %v2099_v29 }
  0xf7   : > { %1587 = vrsqrt.f32 %v550_v27  ;;  %v548_v34 = vrot.slane %v547_v28, 1  ;;  %v527_v40 = vpop.f32.mrf.mxu2  ;;  %vm558_vm2 = vweird.f32 %v550_v27 }
  0xf8   : > { %1589 = vrsqrt.f32 %v590_v31  ;;  %v583_v35 = vadd.f32 %v575_v33, %v574_v32  ;;  %vm598_vm4 = vweird.f32 %v590_v31 }
  0xf9   : > { %v549_v36 = vadd.f32 %v548_v34, %v547_v28 }
  0xfa   : > { %v584_v37 = vrot.slane %v583_v35, 4 }
  0xfb   : > { %v551_v38 = vmax.f32 %v549_v36, 1e-24 }
  0xfc   : > { %v585_v39 = vadd.f32 %v584_v37, %v583_v35 }
  0xfd   : > { %v1588_v41 = vpop.eup %1587  ;;  %1591 = vrsqrt.f32 %v551_v38  ;;  %vm568_vm7 = vweird.f32 %v551_v38 }
  0xfe   : > { %v1590_v45 = vpop.eup %1589  ;;  %v553_v47 = vmul.f32 %v1588_v41, %v550_v27  ;;  %v586_v49 = vrot.slane %v585_v39, 2  ;;  %vm559_vm0 = vweird.f32 %v1588_v41 }
  0xff   : > { %v593_v50 = vmul.f32 %v1590_v45, %v590_v31  ;;  %v529_v62 = vpop.f32.mrf.mxu2  ;;  %vm599_vm1 = vweird.f32 %v1590_v45  ;;  %vm560_vm3 = vmor %vm558_vm2, %vm559_vm0 }
 0x100   : > { %v554_v51 = vmul.f32 %v1588_v41, %v553_v47  ;;  %v587_v52 = vadd.f32 %v586_v49, %v585_v39  ;;  %v1466_v17 = vpack.c.bf16 %v529_v62, %v527_v40  ;;  %vm600_vm5 = vmor %vm598_vm4, %vm599_vm1 }
 0x101   : > { %v594_v53 = vmul.f32 %v1590_v45, %v593_v50 }
 0x102   : > { %v555_v54 = vmul.f32 0.5, %v554_v51  ;;  %v588_v55 = vrot.slane %v587_v52, 1  ;;  %1475 = vst [vmem:[#allocation4 + $0x8] sm:$0xff] %v1466_v17  }
 0x103   : > { %v1592_v57 = vpop.eup %1591  ;;  %v595_v58 = vmul.f32 0.5, %v594_v53 }
 0x104   : > { %v556_v59 = vsub.f32 1.5, %v555_v54  ;;  %v563_v60 = vmul.f32 %v1592_v57, %v551_v38  ;;  %v589_v61 = vadd.f32 %v588_v55, %v587_v52  ;;  %vm569_vm6 = vweird.f32 %v1592_v57 }
 0x105   : > { %v596_v16 = vsub.f32 1.5, %v595_v58  ;;  %vm570_vm8 = vmor %vm568_vm7, %vm569_vm6 }
 0x106   : > { %v557_v18 = vmul.f32 %v1588_v41, %v556_v59  ;;  %v564_v19 = vmul.f32 %v1592_v57, %v563_v60  ;;  %v591_v20 = vmax.f32 %v589_v61, 1e-24 }
 0x107   : > { %v597_v21 = vmul.f32 %v1590_v45, %v596_v16 }
 0x108   : > { %v561_v22 = vsel %vm560_vm3, %v1588_v41, %v557_v18  ;;  %v565_v23 = vmul.f32 0.5, %v564_v19  ;;  %1593 = vrsqrt.f32 %v591_v20  ;;  %vm608_vm10 = vweird.f32 %v591_v20 }
 0x109   : > { %v612_v24 = vmul.f32 0.8, %v561_v22  ;;  %v601_v25 = vsel %vm600_vm5, %v1590_v45, %v597_v21 }
 0x10a   : > { %v626_v26 = vmul.f32 %v601_v25, %v2075_v43  ;;  %v627_v28 = vmul.f32 %v601_v25, %v2085_v48  ;;  %v566_v30 = vsub.f32 1.5, %v565_v23 }
 0x10b   : > { %v614_v27 = vmul.f32 %v612_v24, %v2073_v42  ;;  %v615_v32 = vmul.f32 %v612_v24, %v2081_v46 }
 0x10c   : > { %v1451_v33 = vpack.c.bf16 %v627_v28, %v626_v26  ;;  %v567_v34 = vmul.f32 %v1592_v57, %v566_v30 }
 0x10d   : > { %v1441_v31 = vpack.c.bf16 %v615_v32, %v614_v27 }
 0x10e   : > { %v1594_v35 = vpop.eup %1593  ;;  %1452 = vst [vmem:[#allocation3] sm:$0xff] %v1451_v33   ;;  %v571_v36 = vsel %vm570_vm8, %v1592_v57, %v567_v34 }
 0x10f   : > { %1442 = vst [vmem:[#allocation2] sm:$0xff] %v1441_v31   ;;  %v613_v37 = vmul.f32 0.8, %v571_v36  ;;  %v603_v39 = vmul.f32 %v1594_v35, %v591_v20  ;;  %vm609_vm9 = vweird.f32 %v1594_v35 }
 0x110   : > { %vm610_vm11 = vmor %vm608_vm10, %vm609_vm9 }
 0x111   : > { %v616_v43 = vmul.f32 %v613_v37, %v2077_v44  ;;  %v617_v48 = vmul.f32 %v613_v37, %v2093_v56  ;;  %v604_v40 = vmul.f32 %v1594_v35, %v603_v39 }
 0x113   : > { %v1446_v42 = vpack.c.bf16 %v617_v48, %v616_v43  ;;  %v605_v41 = vmul.f32 0.5, %v604_v40 }
 0x115   : > { %1473 = vst [vmem:[#allocation2 + $0x8] sm:$0xff] %v1446_v42   ;;  %v606_v46 = vsub.f32 1.5, %v605_v41 }
 0x117   : > { %v607_v38 = vmul.f32 %v1594_v35, %v606_v46 }
 0x119   : > { %v611_v45 = vsel %vm610_vm11, %v1594_v35, %v607_v38 }
 0x11a   : > { %v628_v47 = vmul.f32 %v611_v45, %v2097_v63  ;;  %v629_v49 = vmul.f32 %v611_v45, %v2099_v29 }
 0x11c   : > { %v1456_v50 = vpack.c.bf16 %v629_v49, %v628_v47 }
 0x11e   : > { %1474 = vst [vmem:[#allocation3 + $0x8] sm:$0xff] %v1456_v50  }
 0x11f LB: >> { %s2123_s27 = sshll.u32 %s1862_s16, 3  ;;  %vm705_vm12 = vcmask 130048   ;;  %s667_s16 = sadd.s32 1, %s1862_s16   ;;  %s1862_s16 = sphi %s2117_s16, %s667_s16  }
 0x120   : >> { %s670_s30 = scalar_lea.vmem [#allocation2], %s2123_s27  ;;  %s674_s6 = scalar_lea.vmem [#allocation3], %s2123_s27 }
 0x121   : >> { %v1420_v44 = vld [vmem:[%s670_s30] sm:$0xff]  ;;  %s932_s9 = scalar_lea.vmem [#allocation4], %s2123_s27  ;;  %s958_s17 = scalar_lea.vmem [#allocation5], %s2123_s27 }
 0x122   : >> { %683 = vxpose.xlu0.c.b16.start.end [1/1] (short) %v1420_v44, 128  ;;  %p664_p1 = scmp.ge.s32.totalorder %s667_s16, 2  }
 0x123   : > { %s1437_s26 = sshll.u32 (%p664_p1), %s1926_s22, 5  ;;  %s1082_s14 = sshll.u32 (%p664_p1), %s2115_s24, 4  ;;  %s1083_s14 = int_to_ptr.vmem [resolvable:$true] %s1082_s14 }
 0x124   : > { %s1081_s15 = scalar_lea.hbm (%p664_p1), %s2298_s5, %s1437_s26  ;;  %s1069_s22 = scalar_lea.sflag (%p664_p1), [#allocation8], %s2020_s28 }
 0x125   : >> { %v1422_v56 = vld [vmem:[%s674_s6] sm:$0xff]  ;;  %s1084_s29 = sshll.u32 (%p664_p1), %s1081_s15, 4  ;;  %s1085_s29 = int_to_ptr.hbm [resolvable:$true] %s1084_s29 }
 0x126   : >> { %737 = vmatpush.bf16.msra.mxu0 %v1422_v56  ;;  %1484 = vmatpush.bf16.msra.mxu2 %v1422_v56  ;;  %s1794_s16 = sshra.s32 (%p664_p1), %s1085_s29, 4  ;;  %s1795_s16 = int_to_ptr.hbm [resolvable:$true] %s1794_s16 }
 0x127   : > { %s1796_s27 = scalar_lea.hbm (%p664_p1), %s1795_s16, 32  ;;  %p1801_p9 = scmp.lt.s32.totalorder (%p664_p1), %s1795_s16, %s2298_s5 }
 0x128   : > { %p1797_p4 = scmp.ne.s32.totalorder (%p664_p1), %s1795_s16, %s1796_s27 }
 0x12a   : > { %p1798_p8 = pnand (%p664_p1), %p1797_p4, %p1990_p3 }
 0x12c   : > { %p1799_p11 = pneg (%p664_p1), %p1798_p8 }
 0x1ce   : >> { %v691_v63 = vpop.trf.xlu0 }
 0x1cf   : >> { %1331 = vmatmul.msk.bf16.vlgmr.msra.gmra.mxu0 %vm705_vm12, %v691_v63 }
 0x1de   : >> { %v692_v29 = vpop.trf.xlu0 }
 0x1df   : >> { %1332 = vmatmul.msk.bf16.gmra.mxu0 %vm705_vm12, %v692_v29 }
 0x1ee   : >> { %v693_v51 = vpop.trf.xlu0 }
 0x1ef   : >> { %1333 = vmatmul.msk.bf16.gmra.mxu0 %vm705_vm12, %v693_v51 }
 0x1fe   : >> { %v694_v52 = vpop.trf.xlu0 }
 0x1ff   : >> { %1334 = vmatmul.msk.bf16.gmra.mxu0 %vm705_vm12, %v694_v52 }
 0x20e   : >> { %v695_v53 = vpop.trf.xlu0 }
 0x20f   : >> { %1335 = vmatmul.msk.bf16.vlgmr.msra.gmra.mxu2 %vm705_vm12, %v695_v53 }
 0x21e   : >> { %v696_v54 = vpop.trf.xlu0 }
 0x21f   : >> { %1336 = vmatmul.msk.bf16.gmra.mxu2 %vm705_vm12, %v696_v54 }
 0x22e   : >> { %v697_v55 = vpop.trf.xlu0 }
 0x22f   : >> { %1337 = vmatmul.msk.bf16.gmra.mxu2 %vm705_vm12, %v697_v55 }
 0x23e   : >> { %v698_v57 = vpop.trf.xlu0 }
 0x23f   : >> { %1338 = vmatmul.msk.bf16.gmra.mxu2 %vm705_vm12, %v698_v57 }
 0x24c   : >> { %v739_v59 = vpop.f32.mrf.mxu0 }
 0x24d   : >> { %v2160_v48 = vadd.f32 %v739_v59, %v2039_v0  ;;  %v1428_v0 = vld [vmem:[#allocation11] sm:$0xff] (%p664_p1) }
 0x254   : >> { %v741_v61 = vpop.f32.mrf.mxu0 }
 0x255   : >> { %v2172_v41 = vadd.f32 %v741_v61, %v2041_v1 }
 0x25c   : >> { %v744_v16 = vpop.f32.mrf.mxu0 }
 0x25d   : >> { %v2152_v39 = vadd.f32 %v744_v16, %v2043_v2 }
 0x264   : >> { %v746_v20 = vpop.f32.mrf.mxu0 }
 0x265   : >> { %v2168_v42 = vadd.f32 %v746_v20, %v2045_v3  ;;  %v1659_v3 = vld [vmem:[%s2296_s3] ss:$0 sm:$0xff] (%p664_p1) }
 0x26c   : >> { %v749_v23 = vpop.f32.mrf.mxu0 }
 0x26d   : >> { %v2147_v35 = vadd.f32 %v749_v23, %v2047_v4 }
 0x274   : >> { %v751_v28 = vpop.f32.mrf.mxu0 }
 0x275   : >> { %v2163_v40 = vadd.f32 %v751_v28, %v2049_v5 }
 0x27c   : >> { %v754_v33 = vpop.f32.mrf.mxu0 }
 0x27d   : >> { %v2142_v34 = vadd.f32 %v754_v33, %v2051_v6 }
 0x284   : >> { %v756_v37 = vpop.f32.mrf.mxu0 }
 0x285   : >> { %v2155_v43 = vadd.f32 %v756_v37, %v2053_v7 }
 0x292   : >> { %v759_v58 = vpop.f32.mrf.mxu2 }
 0x293   : >> { %v760_v27 = vadd.f32 %v759_v58, %v2055_v8 }
 0x29a   : >> { %v761_v60 = vpop.f32.mrf.mxu2 }
 0x29b   : >> { %v762_v36 = vadd.f32 %v761_v60, %v2057_v9 }
 0x2a2   : >> { %v764_v62 = vpop.f32.mrf.mxu2 }
 0x2a3   : >> { %v765_v25 = vadd.f32 %v764_v62, %v2059_v10 }
 0x2aa   : >> { %v766_v17 = vpop.f32.mrf.mxu2 }
 0x2ab   : >> { %v767_v31 = vadd.f32 %v766_v17, %v2061_v11 }
 0x2b2   : >> { %v769_v18 = vpop.f32.mrf.mxu2 }
 0x2b3   : >> { %v770_v19 = vadd.f32 %v769_v18, %v2063_v12 }
 0x2b5   : >> { %803 = vmax.xlane.f32.xlu1 %v770_v19 }
 0x2ba   : >> { %v771_v21 = vpop.f32.mrf.mxu2 }
 0x2bb   : >> { %v772_v22 = vadd.f32 %v771_v21, %v2065_v13 }
 0x2bd   : >> { %805 = vmax.xlane.f32.xlu2 %v772_v22 }
 0x2c2   : >> { %v774_v24 = vpop.f32.mrf.mxu2 }
 0x2c3   : >> { %v775_v26 = vadd.f32 %v774_v24, %v2067_v14 }
 0x2c5   : >> { %799 = vmax.xlane.f32.xlu2 %v765_v25  ;;  %807 = vmax.xlane.f32.xlu0 %v775_v26 }
 0x2ca   : >> { %v776_v30 = vpop.f32.mrf.mxu2 }
 0x2cb   : >> { %v777_v32 = vadd.f32 %v776_v30, %v2069_v15 }
 0x2cd   : >> { %795 = vmax.xlane.f32.xlu2 %v760_v27  ;;  %809 = vmax.xlane.f32.xlu1 %v777_v32 }
 0x2d5   : >> { %791 = vmax.xlane.f32.xlu2 %v2142_v34  ;;  %801 = vmax.xlane.f32.xlu1 %v767_v31 }
 0x2dd   : >> { %787 = vmax.xlane.f32.xlu2 %v2147_v35  ;;  %797 = vmax.xlane.f32.xlu1 %v762_v36 }
 0x2e5   : >> { %783 = vmax.xlane.f32.xlu2 %v2152_v39  ;;  %793 = vmax.xlane.f32.xlu1 %v2155_v43 }
 0x2ed   : >> { %779 = vmax.xlane.f32.xlu2 %v2160_v48  ;;  %789 = vmax.xlane.f32.xlu1 %v2163_v40 }
 0x2f5   : >> { %785 = vmax.xlane.f32.xlu1 %v2168_v42 }
 0x2fd   : >> { %781 = vmax.xlane.f32.xlu1 %v2172_v41 }
 0x328   : >> { %v804_v38 = vpop.xlane.xlu1 %803 }
 0x329   : >> { %v823_v44 = vsub.f32 %v770_v19, %v804_v38 }
 0x32b   : >> { %v851_v63 = vmul.f32 1.442695, %v823_v44 }
 0x330   : >> { %v806_v46 = vpop.xlane.xlu2 %805 }
 0x331   : >> { %v824_v54 = vsub.f32 %v772_v22, %v806_v46 }
 0x333   : >> { %v853_v58 = vmul.f32 1.442695, %v824_v54 }
 0x338   : >> { %v800_v45 = vpop.xlane.xlu2 %799  ;;  %v808_v47 = vpop.xlane.xlu0 %807 }
 0x339   : >> { %v825_v49 = vsub.f32 %v775_v26, %v808_v47  ;;  %v821_v55 = vsub.f32 %v765_v25, %v800_v45 }
 0x33b   : >> { %v855_v50 = vmul.f32 1.442695, %v825_v49  ;;  %v847_v59 = vmul.f32 1.442695, %v821_v55 }
 0x33d   : >> { %1595 = vpow2.f32 %v855_v50 }
 0x33e   : >> { %1597 = vpow2.f32 %v851_v63 }
 0x340   : >> { %v810_v56 = vpop.xlane.xlu1 %809  ;;  %v796_v51 = vpop.xlane.xlu2 %795 }
 0x341   : >> { %v826_v29 = vsub.f32 %v777_v32, %v810_v56  ;;  %v819_v16 = vsub.f32 %v760_v27, %v796_v51 }
 0x343   : >> { %v857_v52 = vmul.f32 1.442695, %v826_v29  ;;  %v2175_v53 = vpop.eup %1595  ;;  %v843_v19 = vmul.f32 1.442695, %v819_v16 }
 0x344   : >> { %887 = vadd.xlane.f32.xlu2 %v2175_v53  ;;  %v2178_v60 = vpop.eup %1597 }
 0x345   : >> { %1599 = vpow2.f32 %v857_v52 }
 0x346   : >> { %1601 = vpow2.f32 %v853_v58 }
 0x347   : >> { %1603 = vpow2.f32 %v847_v59 }
 0x348   : >> { %v802_v57 = vpop.xlane.xlu1 %801  ;;  %v792_v62 = vpop.xlane.xlu2 %791  ;;  %1605 = vpow2.f32 %v843_v19 }
 0x349   : >> { %v822_v17 = vsub.f32 %v767_v31, %v802_v57  ;;  %v817_v23 = vsub.f32 %v2142_v34, %v792_v62 }
 0x34b   : >> { %v2180_v61 = vpop.eup %1599  ;;  %v849_v20 = vmul.f32 1.442695, %v822_v17  ;;  %v839_v28 = vmul.f32 1.442695, %v817_v23 }
 0x34c   : >> { %889 = vadd.xlane.f32.xlu1 %v2180_v61  ;;  %883 = vadd.xlane.f32.xlu2 %v2178_v60  ;;  %v2184_v21 = vpop.eup %1601 }
 0x34d   : >> { %v2186_v22 = vpop.eup %1603  ;;  %1607 = vpow2.f32 %v849_v20 }
 0x34e   : >> { %v2191_v27 = vpop.eup %1605  ;;  %1609 = vpow2.f32 %v839_v28 }
 0x350   : >> { %v798_v18 = vpop.xlane.xlu1 %797  ;;  %v788_v24 = vpop.xlane.xlu2 %787 }
 0x351   : >> { %v820_v25 = vsub.f32 %v762_v36, %v798_v18  ;;  %v815_v33 = vsub.f32 %v2147_v35, %v788_v24 }
 0x353   : >> { %v845_v30 = vmul.f32 1.442695, %v820_v25  ;;  %v2193_v32 = vpop.eup %1607  ;;  %v835_v36 = vmul.f32 1.442695, %v815_v33 }
 0x354   : >> { %885 = vadd.xlane.f32.xlu1 %v2184_v21  ;;  %879 = vadd.xlane.f32.xlu2 %v2186_v22  ;;  %v2199_v38 = vpop.eup %1609 }
 0x355   : >> { %1611 = vpow2.f32 %v845_v30 }
 0x356   : >> { %1613 = vpow2.f32 %v835_v36 }
 0x358   : >> { %v794_v26 = vpop.xlane.xlu1 %793  ;;  %v784_v31 = vpop.xlane.xlu2 %783 }
 0x359   : >> { %v818_v34 = vsub.f32 %v2155_v43, %v794_v26  ;;  %v813_v47 = vsub.f32 %v2152_v39, %v784_v31 }
 0x35b   : >> { %v841_v46 = vmul.f32 1.442695, %v818_v34  ;;  %v2201_v45 = vpop.eup %1611  ;;  %v831_v49 = vmul.f32 1.442695, %v813_v47 }
 0x35c   : >> { %881 = vadd.xlane.f32.xlu1 %v2193_v32  ;;  %875 = vadd.xlane.f32.xlu2 %v2191_v27  ;;  %v2207_v56 = vpop.eup %1613 }
 0x35d   : >> { %1615 = vpow2.f32 %v841_v46 }
 0x35e   : >> { %1617 = vpow2.f32 %v831_v49 }
 0x360   : >> { %v790_v37 = vpop.xlane.xlu1 %789  ;;  %v780_v50 = vpop.xlane.xlu2 %779 }
 0x361   : >> { %v816_v35 = vsub.f32 %v2163_v40, %v790_v37  ;;  %v811_v29 = vsub.f32 %v2160_v48, %v780_v50 }
 0x363   : >> { %v837_v44 = vmul.f32 1.442695, %v816_v35  ;;  %v2209_v63 = vpop.eup %1615  ;;  %v827_v51 = vmul.f32 1.442695, %v811_v29 }
 0x364   : >> { %877 = vadd.xlane.f32.xlu1 %v2201_v45  ;;  %871 = vadd.xlane.f32.xlu2 %v2199_v38  ;;  %v2215_v52 = vpop.eup %1617 }
 0x365   : >> { %1619 = vpow2.f32 %v837_v44 }
 0x366   : >> { %1621 = vpow2.f32 %v827_v51 }
 0x368   : >> { %v786_v43 = vpop.xlane.xlu1 %785 }
 0x369   : >> { %v814_v39 = vsub.f32 %v2168_v42, %v786_v43 }
 0x36b   : >> { %v833_v40 = vmul.f32 1.442695, %v814_v39  ;;  %v2217_v55 = vpop.eup %1619 }
 0x36c   : >> { %873 = vadd.xlane.f32.xlu1 %v2209_v63  ;;  %867 = vadd.xlane.f32.xlu2 %v2207_v56  ;;  %v2222_v58 = vpop.eup %1621 }
 0x36d   : >> { %1623 = vpow2.f32 %v833_v40 }
 0x370   : >> { %v782_v54 = vpop.xlane.xlu1 %781 }
 0x371   : >> { %v812_v48 = vsub.f32 %v2172_v41, %v782_v54 }
 0x373   : >> { %v829_v57 = vmul.f32 1.442695, %v812_v48  ;;  %v2224_v59 = vpop.eup %1623 }
 0x374   : >> { %869 = vadd.xlane.f32.xlu1 %v2217_v55  ;;  %863 = vadd.xlane.f32.xlu2 %v2215_v52 }
 0x375   : >> { %1625 = vpow2.f32 %v829_v57 }
 0x37b   : >> { %v2228_v42 = vpop.eup %1625 }
 0x37c   : >> { %865 = vadd.xlane.f32.xlu1 %v2224_v59  ;;  %859 = vadd.xlane.f32.xlu2 %v2222_v58 }
 0x384   : >> { %861 = vadd.xlane.f32.xlu1 %v2228_v42 }
 0x3b7   : >> { %v888_v62 = vpop.xlane.xlu2 %887 }
 0x3b8   : >> { %1627 = vrcp.f32 %v888_v62 }
 0x3be   : >> { %v1628_v41 = vpop.eup %1627 }
 0x3bf   : >> { %v890_v16 = vpop.xlane.xlu1 %889  ;;  %v884_v17 = vpop.xlane.xlu2 %883  ;;  %v921_v23 = vmul.f32 %v1628_v41, %v2175_v53 }
 0x3c0   : >> { %1629 = vrcp.f32 %v890_v16 }
 0x3c1   : >> { %1631 = vrcp.f32 %v884_v17 }
 0x3c6   : >> { %v1630_v18 = vpop.eup %1629 }
 0x3c7   : >> { %v886_v19 = vpop.xlane.xlu1 %885  ;;  %v880_v20 = vpop.xlane.xlu2 %879  ;;  %v922_v24 = vmul.f32 %v1630_v18, %v2180_v61 }
 0x3c8   : >> { %1633 = vrcp.f32 %v886_v19  ;;  %v1632_v26 = vpop.eup %1631 }
 0x3c9   : >> { %v930_v25 = vpack.c.bf16 %v922_v24, %v921_v23  ;;  %1635 = vrcp.f32 %v880_v20  ;;  %v919_v34 = vmul.f32 %v1632_v26, %v2178_v60 }
 0x3cb   : >> { %941 = vmatpush.bf16.xpose.msra.mxu1 %v930_v25 }
 0x3ce   : >> { %v1634_v28 = vpop.eup %1633 }
 0x3cf   : >> { %v882_v30 = vpop.xlane.xlu1 %881  ;;  %v876_v33 = vpop.xlane.xlu2 %875  ;;  %v920_v31 = vmul.f32 %v1634_v28, %v2184_v21 }
 0x3d0   : >> { %1637 = vrcp.f32 %v882_v30  ;;  %v1636_v36 = vpop.eup %1635  ;;  %v1424_v30 = vld [vmem:[%s932_s9] sm:$0xff]  ;;  %s1800_s9 = scalar_lea.hbm (%p664_p1), %s2298_s5, 64 }
 0x3d1   : >> { %v929_v37 = vpack.c.bf16 %v920_v31, %v919_v34  ;;  %1639 = vrcp.f32 %v876_v33  ;;  %v917_v47 = vmul.f32 %v1636_v36, %v2186_v22  ;;  %v1432_v31 = vld [vmem:[#allocation11 + $0x20] sm:$0xff] (%p664_p1)  ;;  %v1430_v36 = vld [vmem:[#allocation11 + $0x10] sm:$0xff] (%p664_p1)  ;;  %p1802_p2 = scmp.lt.s32.totalorder (%p664_p1), %s1800_s9, %s1796_s27 }
 0x3d3   : >> { %942 = vmatpush.bf16.xpose.msra.mxu1 %v929_v37  ;;  %v1431_v37 = vld [vmem:[#allocation11 + $0x18] sm:$0xff] (%p664_p1)  ;;  %p1803_p10 = por (%p664_p1), %p1802_p2, %p1801_p9 }
 0x3d5   : > { %p1804_p12 = pnand (%p664_p1), %p1803_p10, %p1799_p11 }
 0x3d6   : >> { %v1638_v46 = vpop.eup %1637 }
 0x3d7   : >> { %v878_v53 = vpop.xlane.xlu1 %877  ;;  %v872_v61 = vpop.xlane.xlu2 %871  ;;  %v918_v35 = vmul.f32 %v1638_v46, %v2193_v32  ;;  %v1429_v46 = vld [vmem:[#allocation11 + $0x8] sm:$0xff] (%p664_p1) }
 0x3d8   : >> { %1641 = vrcp.f32 %v878_v53  ;;  %v1640_v43 = vpop.eup %1639 }
 0x3d9   : >> { %v928_v49 = vpack.c.bf16 %v918_v35, %v917_v47  ;;  %1643 = vrcp.f32 %v872_v61  ;;  %v915_v44 = vmul.f32 %v1640_v43, %v2191_v27 }
 0x3db   : >> { %943 = vmatpush.bf16.xpose.msra.mxu1 %v928_v49 }
 0x3de   : >> { %v1642_v50 = vpop.eup %1641 }
 0x3df   : >> { %v874_v60 = vpop.xlane.xlu1 %873  ;;  %v868_v21 = vpop.xlane.xlu2 %867  ;;  %v916_v29 = vmul.f32 %v1642_v50, %v2201_v45 }
 0x3e0   : >> { %1645 = vrcp.f32 %v874_v60  ;;  %v1644_v51 = vpop.eup %1643 }
 0x3e1   : >> { %v927_v39 = vpack.c.bf16 %v916_v29, %v915_v44  ;;  %1647 = vrcp.f32 %v868_v21  ;;  %v913_v32 = vmul.f32 %v1644_v51, %v2199_v38 }
 0x3e3   : >> { %944 = vmatpush.bf16.xpose.msra.mxu1 %v927_v39 }
 0x3e6   : >> { %v1646_v40 = vpop.eup %1645 }
 0x3e7   : >> { %v870_v22 = vpop.xlane.xlu1 %869  ;;  %v914_v54 = vmul.f32 %v1646_v40, %v2209_v63  ;;  %v864_v48 = vpop.xlane.xlu2 %863 }
 0x3e8   : >> { %1649 = vrcp.f32 %v870_v22  ;;  %v1648_v62 = vpop.eup %1647 }
 0x3e9   : >> { %v926_v57 = vpack.c.bf16 %v914_v54, %v913_v32  ;;  %1651 = vrcp.f32 %v864_v48  ;;  %v911_v45 = vmul.f32 %v1648_v62, %v2207_v56 }
 0x3eb   : >> { %945 = vmatpush.bf16.xpose.msra.mxu1 %v926_v57 }
 0x3ee   : >> { %v1650_v16 = vpop.eup %1649 }
 0x3ef   : >> { %v866_v27 = vpop.xlane.xlu1 %865  ;;  %v912_v17 = vmul.f32 %v1650_v16, %v2217_v55  ;;  %v860_v18 = vpop.xlane.xlu2 %859 }
 0x3f0   : >> { %1653 = vrcp.f32 %v866_v27  ;;  %v1652_v38 = vpop.eup %1651 }
 0x3f1   : >> { %v925_v41 = vpack.c.bf16 %v912_v17, %v911_v45  ;;  %1655 = vrcp.f32 %v860_v18  ;;  %v909_v20 = vmul.f32 %v1652_v38, %v2215_v52 }
 0x3f3   : >> { %946 = vmatpush.bf16.xpose.msra.mxu1 %v925_v41 }
 0x3f6   : >> { %v1654_v19 = vpop.eup %1653 }
 0x3f7   : >> { %v862_v63 = vpop.xlane.xlu1 %861  ;;  %v910_v23 = vmul.f32 %v1654_v19, %v2224_v59  ;;  %v1656_v56 = vpop.eup %1655  ;;  %v1435_v59 = vld [vmem:[#allocation11 + $0x38] sm:$0xff] (%p664_p1) }
 0x3f8   : >> { %1657 = vrcp.f32 %v862_v63  ;;  %v907_v55 = vmul.f32 %v1656_v56, %v2222_v58  ;;  %1045 = vmatpush.bf16.msra.mxu0 (%p664_p1), %v1435_v59  ;;  %v1434_v58 = vld [vmem:[#allocation11 + $0x30] sm:$0xff] (%p664_p1) }
 0x3f9   : >> { %v924_v24 = vpack.c.bf16 %v910_v23, %v909_v20 }
 0x3fb   : >> { %947 = vmatpush.bf16.xpose.msra.mxu1 %v924_v24 }
 0x3fc   : > { %1046 = vmatpush.bf16.msra.mxu0 (%p664_p1), %v1434_v58 }
 0x3fe   : >> { %v1658_v25 = vpop.eup %1657 }
 0x3ff   : >> { %v908_v26 = vmul.f32 %v1658_v25, %v2228_v42  ;;  %v1433_v42 = vld [vmem:[#allocation11 + $0x28] sm:$0xff] (%p664_p1) }
 0x400   : > { %1047 = vmatpush.bf16.msra.mxu0 (%p664_p1), %v1433_v42 }
 0x401   : >> { %v923_v28 = vpack.c.bf16 %v908_v26, %v907_v55 }
 0x403   : >> { %948 = vmatpush.bf16.xpose.msra.mxu1 %v923_v28 }
 0x404   : > { %1048 = vmatpush.bf16.msra.mxu0 (%p664_p1), %v1432_v31 }
 0x408   : > { %1049 = vmatpush.bf16.msra.mxu0 (%p664_p1), %v1431_v37 }
 0x40a   : >> { %949 = vmatmul.bf16.vlgmr.msra.gmra.mxu1 %v1424_v30 }
 0x40b   : > { %1485 = vmatpush.bf16.msra.mxu1 (%p664_p1), %v1435_v59 }
 0x40c   : > { %1050 = vmatpush.bf16.msra.mxu0 (%p664_p1), %v1430_v36 }
 0x40f   : > { %1486 = vmatpush.bf16.msra.mxu1 (%p664_p1), %v1434_v58 }
 0x410   : > { %1051 = vmatpush.bf16.msra.mxu0 (%p664_p1), %v1429_v46 }
 0x413   : > { %1487 = vmatpush.bf16.msra.mxu1 (%p664_p1), %v1433_v42 }
 0x414   : > { %1052 = vmatpush.bf16.msra.mxu0 (%p664_p1), %v1428_v0 }
 0x417   : > { %1488 = vmatpush.bf16.msra.mxu1 (%p664_p1), %v1432_v31 }
 0x41b   : > { %1489 = vmatpush.bf16.msra.mxu1 (%p664_p1), %v1431_v37 }
 0x41f   : > { %1490 = vmatpush.bf16.msra.mxu1 (%p664_p1), %v1430_v36 }
 0x423   : > { %1491 = vmatpush.bf16.msra.mxu1 (%p664_p1), %v1429_v46 }
 0x427   : > { %1492 = vmatpush.bf16.msra.mxu1 (%p664_p1), %v1428_v0 }
 0x487   : >> { %v950_v33 = vpop.f32.mrf.mxu1 }
 0x48e   : > { %666 = sbr.rel (!%p664_p1) target bundleno = 287 (0x11f), region = 108 }
 0x48f   : >> { %v952_v34 = vpop.f32.mrf.mxu1 }
 0x490   : >> { %v1471_v52 = vpack.c.bf16 %v952_v34, %v950_v33 }
 0x492   : >> { %1472 = vst [vmem:[%s958_s17] sm:$0xff] %v1471_v52  }
 0x499   : > { %v1426_v1 = vld [vmem:[#allocation5] sm:$0xff]  ;;  %v1427_v2 = vld [vmem:[#allocation5 + $0x8] sm:$0xff] }
 0x49a   : > { %1053 = vmatmul.bf16.vlgmr.msra.gmra.mxu0 %v1426_v1  ;;  %1058 = vmatmul.bf16.vlgmr.msra.gmra.mxu1 %v1427_v2 }
 0x517   : > { %v1054_v4 = vpop.f32.mrf.mxu0  ;;  %v1059_v5 = vpop.f32.mrf.mxu1 }
 0x518   : > { %v1055_v6 = vadd.f32 %v1659_v3, %v1054_v4  ;;  %v1060_v7 = vadd.f32 %v1659_v3, %v1059_v5 }
 0x51a   : > { %1064 = vst [vmem:[%s2115_s24] sm:$0xff] %v1055_v6 }
 0x51b   : > { %1066 = vst [vmem:[%s2115_s24 + $0x10] sm:$0xff] %v1060_v7 }
 0x51f   : > { %v1056_v8 = vpop.f32.mrf.mxu0  ;;  %v1061_v9 = vpop.f32.mrf.mxu1 }
 0x520   : > { %v1057_v10 = vadd.f32 %v1659_v3, %v1056_v8  ;;  %v1062_v11 = vadd.f32 %v1659_v3, %v1061_v9 }
 0x522   : > { %1065 = vst [vmem:[%s2115_s24 + $0x8] sm:$0xff] %v1057_v10 }
 0x523   : > { %1067 = vst [vmem:[%s2115_s24 + $0x18] sm:$0xff] %v1062_v11 }
 0x524   : > { %1807 = shalt.err (!%p1804_p12)
}
 0x525   : > { %s1873_s28 = smov 128   ;;  %s1874_s24 = smov 8  }
 0x526   : > { %1507 = dma.vmem_to_hbm [thread:$0]  (%p1990_p3), %s1083_s14, 512, %s1085_s29, %s1069_s22, %s1873_s28, %s1873_s28, %s1874_s24  }
 0x527 PF: > { %s1099_s23 = sand.u32 1, %s1846_s18   ;;  %p2307_p13 = scmp.ge.s32.totalorder %s1858_s21, 2 }
 0x528   : > { %s1100_s26 = scalar_lea.sflag [#allocation8], %s1099_s23 }
 0x529   : > { %p1524_p0 = pnand %p2307_p13, %p1940_p6 }
 0x52b   : > { %p1525_p5 = pneg %p1524_p0 }
 0x52d   : > { %1841 = dma.done.wait (%p1525_p5), %s1100_s26, 512  }
 0x52e   : > { %1843 = vsyncadd (%p1525_p5), %s1100_s26, 4294966784  ;;  %p20_p7 = scmp.ge.s32.totalorder %s1977_s8, 4   ;;  %s2308_s18 = smov %s1850_s19 }
 0x52f   : > { %s2309_s19 = smov %s1854_s20  ;;  %s2310_s20 = smov %s1986_s11 }
 0x530   : > { %s2311_s21 = smov %s1977_s8  ;;  %22 = sbr.rel (!%p20_p7) target bundleno = 7 (0x7), region = 119 }
 0x535   :  { %1106 = vsyncpa [#allocation7], 1 }
 0x536   :  { %1108 = vsyncpa [#allocation7 + $0x1], 1 }
 0x537   :  { %1109 = vsyncpa [#allocation10], 1 }
 0x538   :  { %1110 = vsyncpa [#allocation13], 1 }
 0x539   :  { %1111 = vsyncpa [#allocation8], 1 }
 0x53a   :  { %1113 = vsyncpa [#allocation8 + $0x1], 1 }

// kernel: tpu_custom_call.1
= control target key start
LH: loop header
LB: loop body
LE: loop exit
PB: predicated region body
PF: predicated region fallthrough
CT: control target
= control target key end

     0   :  { %10 = vsyncpa [#allocation7], 0  ;;  %s2293_s0 = inlined_call_operand.hbm [shape: bf16[4,16,128], index: 0, kind: input, shape index: {}]   ;;  %s2294_s1 = inlined_call_operand.hbm [shape: bf16[128,384], index: 1, kind: input, shape index: {}]   ;;  %s2295_s2 = inlined_call_operand.hbm [shape: bf16[128,128], index: 2, kind: input, shape index: {}]   ;;  %s2296_s3 = inlined_call_operand.vmem [shape: f32[1,128], index: 3, kind: input, shape index: {}]   ;;  %s2297_s4 = inlined_call_operand.hbm [shape: f32[128,128], index: 4, kind: input, shape index: {}]   ;;  %s2298_s5 = inlined_call_operand.hbm [shape: f32[4,16,128], index: 5, kind: output, shape index: {}]  }
   0x1   :  { %12 = vsyncpa [#allocation7 + $0x1], 0 }
   0x2   :  { %13 = vsyncpa [#allocation10], 0 }
   0x3   :  { %14 = vsyncpa [#allocation13], 0 }
   0x4   :  { %15 = vsyncpa [#allocation8], 0 }
   0x5   :  { %17 = vsyncpa [#allocation8 + $0x1], 0  ;;  %s1905_s18 = smov 0   ;;  %s1907_s19 = smov 0  }
   0x6   :  { %s1909_s20 = smov 0   ;;  %s1911_s21 = smov 0  }
   0x7 LB: > { %s1926_s22 = sadd.s32 4294967295, %s1858_s21   ;;  %s1200_s23 = sadd.s32 4294967294, %s1858_s21   ;;  %s1858_s21 = sphi %s1911_s21, %s2311_s21   ;;  %s1854_s20 = sphi %s1909_s20, %s2310_s20   ;;  %s1850_s19 = sphi %s1907_s19, %s2309_s19   ;;  %s1846_s18 = sphi %s1905_s18, %s2308_s18  }
   0x8   : > { %p43_p0 = scmp.ne.s32.totalorder %s1850_s19, %s1846_s18  ;;  %p44_p1 = scmp.eq.s32.totalorder %s1926_s22, 0 }
   0x9   : > { %p151_p2 = scmp.eq.s32.totalorder %s1926_s22, 1  ;;  %p157_p3 = scmp.eq.s32.totalorder %s1200_s23, 1 }
   0xa   : > { %p1935_p4 = por %p44_p1, %p43_p0  ;;  %p1201_p5 = scmp.ge.s32.totalorder %s1858_s21, 1 }
   0xb   : > { %p1940_p6 = por %p157_p3, %p43_p0  ;;  %p164_p7 = scmp.lt.s32.totalorder %s1858_s21, 3 }
   0xc   : > { %s175_s28 = sshll.u32 %s2294_s1, 4  ;;  %s1864_s30 = smov [#allocation9]   ;;  %s176_s28 = int_to_ptr.hbm [resolvable:$true] %s175_s28 }
   0xd   : > { %p1948_p8 = pnand %p1201_p5, %p164_p7  ;;  %s177_s6 = sshll.u32 %s1864_s30, 4  ;;  %s178_s6 = int_to_ptr.vmem [resolvable:$true] %s177_s6 }
   0xe   : > { %s189_s10 = sshll.u32 %s2295_s2, 4  ;;  %s1865_s11 = smov 192   ;;  %s190_s10 = int_to_ptr.hbm [resolvable:$true] %s189_s10 }
   0xf   : > { %p1509_p9 = pneg %p1948_p8  ;;  %s1866_s12 = smov 12  }
  0x10   : > { %s1867_s13 = smov [#allocation11]   ;;  %s2299_s15 = smov 64  }
  0x11   : > { %p1956_p10 = pnand %p1509_p9, %p44_p1  ;;  %s191_s14 = sshll.u32 %s1867_s13, 4  ;;  %s192_s14 = int_to_ptr.vmem [resolvable:$true] %s191_s14 }
  0x12   : > { %s1869_s16 = smov 4   ;;  %s206_s26 = sshll.u32 %s2297_s4, 4  ;;  %s207_s26 = int_to_ptr.hbm [resolvable:$true] %s206_s26 }
  0x13   : > { %1512 = dma.hbm_to_vmem [thread:$0]  (!%p1956_p10), %s176_s28, 3072, %s178_s6, [#allocation10], %s1865_s11, %s1865_s11, %s1866_s12  }
  0x14   : > { %1515 = dma.hbm_to_vmem [thread:$0]  (!%p1956_p10), %s190_s10, 1024, %s192_s14, [#allocation10], %s2299_s15, %s2299_s15, %s1869_s16  }
  0x15   : > { %s1870_s27 = smov [#allocation12]   ;;  %s1871_s30 = smov 128  }
  0x16   : > { %s208_s28 = sshll.u32 %s1870_s27, 4  ;;  %s1872_s6 = smov 8   ;;  %s209_s28 = int_to_ptr.vmem [resolvable:$true] %s208_s28 }
  0x17   : > { %1518 = dma.hbm_to_vmem [thread:$0]  (!%p1956_p10), %s207_s26, 2048, %s209_s28, [#allocation13], %s1871_s30, %s1871_s30, %s1872_s6  }
  0x18   : > { %s1977_s8 = sadd.s32 1, %s1858_s21   ;;  %s30_s10 = sadd.s32 1, %s1854_s20 }
  0x19   : > { %s27_s9 = ssub.s32 %s1858_s21, %s1977_s8  ;;  %p37_p13 = scmp.ne.s32.totalorder %s1854_s20, %s1850_s19 }
  0x1a   : > { %p28_p12 = scmp.eq.s32.totalorder %s27_s9, 0  ;;  %p38_p0 = scmp.eq.s32.totalorder %s1858_s21, 0 }
  0x1b   : > { %p1990_p3 = por %p151_p2, %p37_p13  ;;  %p1530_p5 = scmp.lt.s32.totalorder %s1858_s21, 2 }
  0x1c   : > { %s1986_s11 = scalar_select %p28_p12, %s1854_s20, %s30_s10  }
  0x1d   : > { %s222_s13 = sand.u32 1, %s1854_s20   ;;  %s1392_s14 = sshll.u32 %s1858_s21, 4 }
  0x1e   : > { %p39_p7 = por %p38_p0, %p37_p13  ;;  %s1206_s7 = sshll.u32 %s222_s13, 4 }
  0x1f   : > { %s232_s26 = scalar_lea.hbm %s2293_s0, %s1392_s14  ;;  %s226_s28 = scalar_lea.vmem [#allocation6], %s1206_s7 }
  0x20   : > { %s233_s27 = sshll.u32 %s232_s26, 4  ;;  %s235_s30 = sshll.u32 %s226_s28, 4  ;;  %s234_s27 = int_to_ptr.hbm [resolvable:$true] %s233_s27  ;;  %s236_s30 = int_to_ptr.vmem [resolvable:$true] %s235_s30 }
  0x21   : > { %p2000_p9 = pnand %p1530_p5, %p39_p7  ;;  %s223_s9 = scalar_lea.sflag [#allocation7], %s222_s13 }
  0x22   : > { %s1750_s10 = sshra.s32 %s234_s27, 4  ;;  %s1757_s7 = scalar_lea.hbm %s2293_s0, 32  ;;  %s1751_s10 = int_to_ptr.hbm [resolvable:$true] %s1750_s10 }
  0x23   : > { %s1752_s15 = scalar_lea.hbm %s1751_s10, 16  ;;  %p1754_p10 = pneg %p2000_p9 }
  0x24   : > { %p1753_p2 = scmp.ne.s32.totalorder %s1751_s10, %s1752_s15  ;;  %p1758_p0 = scmp.lt.s32.totalorder %s1751_s10, %s2293_s0 }
  0x25   : > { %p1759_p5 = scmp.lt.s32.totalorder %s1757_s7, %s1752_s15 }
  0x26   : > { %p1755_p12 = pnand %p1754_p10, %p1753_p2 }
  0x27   : > { %p1760_p7 = por %p1759_p5, %p1758_p0 }
  0x28   : > { %p1756_p13 = pneg %p1755_p12 }
  0x2a   : > { %p1761_p11 = pnand %p1760_p7, %p1756_p13 }
  0x2c   : > { %1764 = shalt.err (!%p1761_p11)
}
  0x2d   : > { %s2306_s13 = smov 64   ;;  %247 = sbr.rel (%p1948_p8) target bundleno = 1319 (0x527), region = 40 }
  0x2e   : > { %1522 = dma.hbm_to_vmem [thread:$0]  (!%p2000_p9), %s234_s27, 256, %s236_s30, %s223_s9, %s2306_s13, %s2306_s13, %s1869_s16  }
  0x2f   : > { %s2020_s28 = sand.u32 (!%p1948_p8), 1, %s1850_s19  }
  0x30   : > { %s1211_s10 = sshll.u32 (!%p1948_p8), %s2020_s28, 4  ;;  %s250_s15 = scalar_lea.sflag (!%p1948_p8), [#allocation7], %s2020_s28 }
  0x31   : > { %s2024_s14 = scalar_lea.vmem (!%p1948_p8), [#allocation6], %s1211_s10 }
  0x32   : > { %1829 = dma.done.wait (%p1935_p4), %s250_s15, 256  }
  0x33   : > { %1831 = vsyncadd (%p1935_p4), %s250_s15, 4294967040 }
  0x34   : > { %1833 = dma.done.wait (%p44_p1), [#allocation10], 4096  }
  0x35   : > { %1835 = vsyncadd (%p44_p1), [#allocation10], 4294963200 }
  0x36   : > { %1837 = dma.done.wait (%p44_p1), [#allocation13], 2048  }
  0x37   : > { %1839 = vsyncadd (%p44_p1), [#allocation13], 4294965248  ;;  %s1215_s29 = sshll.u32 %s2020_s28, 5  ;;  %v2039_v0 = vld [vmem:[#allocation12] sm:$0xff]  ;;  %v2041_v1 = vld [vmem:[#allocation12 + $0x8] sm:$0xff]  ;;  %s2117_s16 = smov 0  }
  0x38   : > { %v2043_v2 = vld [vmem:[#allocation12 + $0x10] sm:$0xff]  ;;  %v2045_v3 = vld [vmem:[#allocation12 + $0x18] sm:$0xff]  ;;  %v2047_v4 = vld [vmem:[#allocation12 + $0x20] sm:$0xff]  ;;  %s2115_s24 = scalar_lea.vmem [#allocation14], %s1215_s29 }
  0x39   : > { %v2049_v5 = vld [vmem:[#allocation12 + $0x28] sm:$0xff]  ;;  %v2051_v6 = vld [vmem:[#allocation12 + $0x30] sm:$0xff]  ;;  %v2053_v7 = vld [vmem:[#allocation12 + $0x38] sm:$0xff] }
  0x3a   : > { %v2055_v8 = vld [vmem:[#allocation12 + $0x40] sm:$0xff]  ;;  %v2057_v9 = vld [vmem:[#allocation12 + $0x48] sm:$0xff]  ;;  %v2059_v10 = vld [vmem:[#allocation12 + $0x50] sm:$0xff] }
  0x3b   : > { %v2061_v11 = vld [vmem:[#allocation12 + $0x58] sm:$0xff]  ;;  %v2063_v12 = vld [vmem:[#allocation12 + $0x60] sm:$0xff]  ;;  %v2065_v13 = vld [vmem:[#allocation12 + $0x68] sm:$0xff] }
  0x3c   : > { %v2067_v14 = vld [vmem:[#allocation12 + $0x70] sm:$0xff]  ;;  %v2069_v15 = vld [vmem:[#allocation12 + $0x78] sm:$0xff]  ;;  %v1310_v16 = vld [vmem:[#allocation9 + $0xa8] sm:$0xf] }
  0x3d   : > { %v1417_v17 = vld [vmem:[#allocation9 + $0xb0] sm:$0xf0]  ;;  %v1416_v19 = vld [vmem:[#allocation9 + $0xac] sm:$0xf]  ;;  %v1312_v20 = vld [vmem:[#allocation9 + $0xb4] sm:$0xf0] }
  0x3e   : > { %v1311_v18 = vor.u32 %v1417_v17, %v1310_v16  ;;  %v1298_v21 = vld [vmem:[#allocation9 + $0x90] sm:$0xf]  ;;  %v1315_v22 = vor.u32 %v1416_v19, %v1312_v20  ;;  %v1414_v23 = vld [vmem:[#allocation9 + $0x98] sm:$0xf0]  ;;  %v1413_v24 = vld [vmem:[#allocation9 + $0x94] sm:$0xf] }
  0x3f   : > { %v1300_v25 = vld [vmem:[#allocation9 + $0x9c] sm:$0xf0]  ;;  %v1299_v26 = vor.u32 %v1414_v23, %v1298_v21  ;;  %v1286_v28 = vld [vmem:[#allocation9 + $0x78] sm:$0xf]  ;;  %v1411_v29 = vld [vmem:[#allocation9 + $0x80] sm:$0xf0] }
  0x40   : > { %475 = vmatpush.bf16.msra.mxu0 %v1311_v18  ;;  %1476 = vmatpush.bf16.msra.mxu3 %v1311_v18  ;;  %v1303_v27 = vor.u32 %v1413_v24, %v1300_v25  ;;  %v1410_v30 = vld [vmem:[#allocation9 + $0x7c] sm:$0xf]  ;;  %v1288_v31 = vld [vmem:[#allocation9 + $0x84] sm:$0xf0]  ;;  %v1287_v32 = vor.u32 %v1411_v29, %v1286_v28  ;;  %v1274_v34 = vld [vmem:[#allocation9 + $0x60] sm:$0xf] }
  0x41   : > { %494 = vmatpush.bf16.msra.mxu1 %v1315_v22  ;;  %v1291_v33 = vor.u32 %v1410_v30, %v1288_v31  ;;  %v1408_v35 = vld [vmem:[#allocation9 + $0x68] sm:$0xf0]  ;;  %v1407_v36 = vld [vmem:[#allocation9 + $0x64] sm:$0xf]  ;;  %v1276_v37 = vld [vmem:[#allocation9 + $0x6c] sm:$0xf0] }
  0x42   : > { %v1318_v38 = vld [vmem:[#allocation9 + $0xb0] sm:$0xf]  ;;  %v1418_v39 = vld [vmem:[#allocation9 + $0xb8] sm:$0xf0]  ;;  %v1275_v40 = vor.u32 %v1408_v35, %v1274_v34  ;;  %v1306_v42 = vld [vmem:[#allocation9 + $0x98] sm:$0xf]  ;;  %v1279_v43 = vor.u32 %v1407_v36, %v1276_v37 }
  0x43   : > { %v1319_v41 = vor.u32 %v1418_v39, %v1318_v38  ;;  %v1262_v44 = vld [vmem:[#allocation9 + $0x48] sm:$0xf]  ;;  %v1405_v45 = vld [vmem:[#allocation9 + $0x50] sm:$0xf0]  ;;  %v1415_v46 = vld [vmem:[#allocation9 + $0xa0] sm:$0xf0] }
  0x44   : > { %476 = vmatpush.bf16.msra.mxu0 %v1299_v26  ;;  %1477 = vmatpush.bf16.msra.mxu3 %v1299_v26  ;;  %v1404_v47 = vld [vmem:[#allocation9 + $0x4c] sm:$0xf]  ;;  %v1264_v48 = vld [vmem:[#allocation9 + $0x54] sm:$0xf0]  ;;  %v1307_v49 = vor.u32 %v1415_v46, %v1306_v42  ;;  %v1294_v50 = vld [vmem:[#allocation9 + $0x80] sm:$0xf]  ;;  %v1263_v52 = vor.u32 %v1405_v45, %v1262_v44 }
  0x45   : > { %495 = vmatpush.bf16.msra.mxu1 %v1303_v27  ;;  %513 = vmatpush.bf16.msra.mxu2 %v1319_v41  ;;  %v1412_v51 = vld [vmem:[#allocation9 + $0x88] sm:$0xf0]  ;;  %v1267_v53 = vor.u32 %v1404_v47, %v1264_v48  ;;  %v1250_v54 = vld [vmem:[#allocation9 + $0x30] sm:$0xf]  ;;  %v1402_v55 = vld [vmem:[#allocation9 + $0x38] sm:$0xf0] }
  0x46   : > { %v1401_v56 = vld [vmem:[#allocation9 + $0x34] sm:$0xf]  ;;  %v1252_v57 = vld [vmem:[#allocation9 + $0x3c] sm:$0xf0]  ;;  %v1295_v58 = vor.u32 %v1412_v51, %v1294_v50  ;;  %v1282_v59 = vld [vmem:[#allocation9 + $0x68] sm:$0xf]  ;;  %v1251_v61 = vor.u32 %v1402_v55, %v1250_v54 }
  0x47   : > { %v1409_v60 = vld [vmem:[#allocation9 + $0x70] sm:$0xf0]  ;;  %v1255_v62 = vor.u32 %v1401_v56, %v1252_v57  ;;  %v1238_v63 = vld [vmem:[#allocation9 + $0x18] sm:$0xf]  ;;  %v1399_v16 = vld [vmem:[#allocation9 + $0x20] sm:$0xf0] }
  0x48   : > { %477 = vmatpush.bf16.msra.mxu0 %v1287_v32  ;;  %1478 = vmatpush.bf16.msra.mxu3 %v1287_v32  ;;  %v1398_v17 = vld [vmem:[#allocation9 + $0x1c] sm:$0xf]  ;;  %v1240_v18 = vld [vmem:[#allocation9 + $0x24] sm:$0xf0]  ;;  %v1283_v19 = vor.u32 %v1409_v60, %v1282_v59  ;;  %v1270_v20 = vld [vmem:[#allocation9 + $0x50] sm:$0xf]  ;;  %v1239_v22 = vor.u32 %v1399_v16, %v1238_v63 }
  0x49   : > { %496 = vmatpush.bf16.msra.mxu1 %v1291_v33  ;;  %514 = vmatpush.bf16.msra.mxu2 %v1307_v49  ;;  %v1406_v21 = vld [vmem:[#allocation9 + $0x58] sm:$0xf0]  ;;  %v1243_v23 = vor.u32 %v1398_v17, %v1240_v18  ;;  %v1226_v24 = vld [vmem:[#allocation9] sm:$0xf]  ;;  %v1396_v25 = vld [vmem:[#allocation9 + $0x8] sm:$0xf0] }
  0x4a   : > { %v1395_v26 = vld [vmem:[#allocation9 + $0x4] sm:$0xf]  ;;  %v1228_v27 = vld [vmem:[#allocation9 + $0xc] sm:$0xf0]  ;;  %v1271_v28 = vor.u32 %v1406_v21, %v1270_v20  ;;  %v1258_v29 = vld [vmem:[#allocation9 + $0x38] sm:$0xf]  ;;  %v1227_v31 = vor.u32 %v1396_v25, %v1226_v24 }
  0x4b   : > { %v1403_v30 = vld [vmem:[#allocation9 + $0x40] sm:$0xf0]  ;;  %v1231_v32 = vor.u32 %v1395_v26, %v1228_v27  ;;  %v1394_v35 = vld [vmem:[%s2024_s14 + $0x8] sm:$0xff]  ;;  %v1246_v36 = vld [vmem:[#allocation9 + $0x20] sm:$0xf] }
  0x4c   : > { %478 = vmatpush.bf16.msra.mxu0 %v1275_v40  ;;  %1479 = vmatpush.bf16.msra.mxu3 %v1275_v40  ;;  %v1393_v33 = vld [vmem:[%s2024_s14] sm:$0xff]  ;;  %v1259_v34 = vor.u32 %v1403_v30, %v1258_v29  ;;  %v1400_v37 = vld [vmem:[#allocation9 + $0x28] sm:$0xf0]  ;;  %v1234_v39 = vld [vmem:[#allocation9 + $0x8] sm:$0xf] }
  0x4d   : > { %497 = vmatpush.bf16.msra.mxu1 %v1279_v43  ;;  %515 = vmatpush.bf16.msra.mxu2 %v1295_v58  ;;  %v1247_v38 = vor.u32 %v1400_v37, %v1246_v36  ;;  %v1397_v40 = vld [vmem:[#allocation9 + $0x10] sm:$0xf0] }
  0x4e   : > { %v1235_v41 = vor.u32 %v1397_v40, %v1234_v39 }
  0x50   : > { %479 = vmatpush.bf16.msra.mxu0 %v1263_v52  ;;  %1480 = vmatpush.bf16.msra.mxu3 %v1263_v52 }
  0x51   : > { %498 = vmatpush.bf16.msra.mxu1 %v1267_v53  ;;  %516 = vmatpush.bf16.msra.mxu2 %v1283_v19 }
  0x54   : > { %480 = vmatpush.bf16.msra.mxu0 %v1251_v61  ;;  %1481 = vmatpush.bf16.msra.mxu3 %v1251_v61 }
  0x55   : > { %499 = vmatpush.bf16.msra.mxu1 %v1255_v62  ;;  %517 = vmatpush.bf16.msra.mxu2 %v1271_v28 }
  0x58   : > { %481 = vmatpush.bf16.msra.mxu0 %v1239_v22  ;;  %1482 = vmatpush.bf16.msra.mxu3 %v1239_v22 }
  0x59   : > { %500 = vmatpush.bf16.msra.mxu1 %v1243_v23  ;;  %518 = vmatpush.bf16.msra.mxu2 %v1259_v34 }
  0x5c   : > { %482 = vmatpush.bf16.msra.mxu0 %v1227_v31  ;;  %1483 = vmatpush.bf16.msra.mxu3 %v1227_v31 }
  0x5d   : > { %501 = vmatpush.bf16.msra.mxu1 %v1231_v32  ;;  %519 = vmatpush.bf16.msra.mxu2 %v1247_v38 }
  0x5f   : > { %483 = vmatmul.bf16.vlgmr.msra.gmra.mxu0 %v1393_v33  ;;  %488 = vmatmul.bf16.vlgmr.msra.gmra.mxu3 %v1394_v35 }
  0x60   : > { %502 = vmatmul.bf16.vlgmr.msra.gmra.mxu1 %v1393_v33 }
  0x61   : > { %520 = vmatpush.bf16.msra.mxu2 %v1235_v41 }
  0x64   : > { %521 = vmatmul.bf16.vlgmr.msra.gmra.mxu2 %v1393_v33 }
  0x70   : > { %507 = vmatmul.bf16.gmra.mxu1 %v1394_v35 }
  0x74   : > { %526 = vmatmul.bf16.gmra.mxu2 %v1394_v35 }
  0xdc   : > { %v2073_v42 = vpop.f32.mrf.mxu0 }
  0xdd   : > { %v2075_v43 = vpop.f32.mrf.mxu1  ;;  %v532_v45 = vmul.f32 %v2073_v42, %v2073_v42 }
  0xde   : > { %v572_v49 = vmul.f32 %v2075_v43, %v2075_v43 }
  0xe2   : > { %v2077_v44 = vpop.f32.mrf.mxu3 }
  0xe3   : > { %v534_v53 = vmul.f32 %v2077_v44, %v2077_v44 }
  0xe4   : > { %v2081_v46 = vpop.f32.mrf.mxu0 }
  0xe5   : > { %v533_v47 = vmul.f32 %v2081_v46, %v2081_v46  ;;  %v2085_v48 = vpop.f32.mrf.mxu1 }
  0xe6   : > { %v573_v50 = vmul.f32 %v2085_v48, %v2085_v48 }
  0xe7   : > { %v536_v51 = vadd.f32 %v533_v47, %v532_v45  ;;  %v522_v60 = vpop.f32.mrf.mxu2 }
  0xe8   : > { %v576_v52 = vadd.f32 %v573_v50, %v572_v49 }
  0xe9   : > { %v537_v54 = vrot.slane %v536_v51, 4 }
  0xea   : > { %v577_v55 = vrot.slane %v576_v52, 4  ;;  %v2093_v56 = vpop.f32.mrf.mxu3 }
  0xeb   : > { %v538_v57 = vadd.f32 %v537_v54, %v536_v51  ;;  %v535_v58 = vmul.f32 %v2093_v56, %v2093_v56 }
  0xec   : > { %v578_v59 = vadd.f32 %v577_v55, %v576_v52 }
  0xed   : > { %v539_v61 = vrot.slane %v538_v57, 2  ;;  %v543_v62 = vadd.f32 %v535_v58, %v534_v53  ;;  %v2097_v63 = vpop.f32.mrf.mxu1 }
  0xee   : > { %v579_v16 = vrot.slane %v578_v59, 2  ;;  %v574_v32 = vmul.f32 %v2097_v63, %v2097_v63 }
  0xef   : > { %v540_v17 = vadd.f32 %v539_v61, %v538_v57  ;;  %v544_v18 = vrot.slane %v543_v62, 4  ;;  %v524_v26 = vpop.f32.mrf.mxu2 }
  0xf0   : > { %v580_v19 = vadd.f32 %v579_v16, %v578_v59  ;;  %v1461_v30 = vpack.c.bf16 %v524_v26, %v522_v60 }
  0xf1   : > { %v541_v20 = vrot.slane %v540_v17, 1  ;;  %v545_v21 = vadd.f32 %v544_v18, %v543_v62 }
  0xf2   : > { %v581_v22 = vrot.slane %v580_v19, 1  ;;  %1462 = vst [vmem:[#allocation4] sm:$0xff] %v1461_v30  }
  0xf3   : > { %v542_v23 = vadd.f32 %v541_v20, %v540_v17  ;;  %v546_v24 = vrot.slane %v545_v21, 2 }
  0xf4   : > { %v582_v25 = vadd.f32 %v581_v22, %v580_v19 }
  0xf5   : > { %v550_v27 = vmax.f32 %v542_v23, 1e-24  ;;  %v547_v28 = vadd.f32 %v546_v24, %v545_v21  ;;  %v2099_v29 = vpop.f32.mrf.mxu1 }
  0xf6   : > { %v590_v31 = vmax.f32 %v582_v25, 1e-24  ;;  %v575_v33 = vmul.f32 %v2099_v29, %v2099_v29 }
  0xf7   : > { %1587 = vrsqrt.f32 %v550_v27  ;;  %v548_v34 = vrot.slane %v547_v28, 1  ;;  %v527_v40 = vpop.f32.mrf.mxu2  ;;  %vm558_vm2 = vweird.f32 %v550_v27 }
  0xf8   : > { %1589 = vrsqrt.f32 %v590_v31  ;;  %v583_v35 = vadd.f32 %v575_v33, %v574_v32  ;;  %vm598_vm4 = vweird.f32 %v590_v31 }
  0xf9   : > { %v549_v36 = vadd.f32 %v548_v34, %v547_v28 }
  0xfa   : > { %v584_v37 = vrot.slane %v583_v35, 4 }
  0xfb   : > { %v551_v38 = vmax.f32 %v549_v36, 1e-24 }
  0xfc   : > { %v585_v39 = vadd.f32 %v584_v37, %v583_v35 }
  0xfd   : > { %v1588_v41 = vpop.eup %1587  ;;  %1591 = vrsqrt.f32 %v551_v38  ;;  %vm568_vm7 = vweird.f32 %v551_v38 }
  0xfe   : > { %v1590_v45 = vpop.eup %1589  ;;  %v553_v47 = vmul.f32 %v1588_v41, %v550_v27  ;;  %v586_v49 = vrot.slane %v585_v39, 2  ;;  %vm559_vm0 = vweird.f32 %v1588_v41 }
  0xff   : > { %v593_v50 = vmul.f32 %v1590_v45, %v590_v31  ;;  %v529_v62 = vpop.f32.mrf.mxu2  ;;  %vm599_vm1 = vweird.f32 %v1590_v45  ;;  %vm560_vm3 = vmor %vm558_vm2, %vm559_vm0 }
 0x100   : > { %v554_v51 = vmul.f32 %v1588_v41, %v553_v47  ;;  %v587_v52 = vadd.f32 %v586_v49, %v585_v39  ;;  %v1466_v17 = vpack.c.bf16 %v529_v62, %v527_v40  ;;  %vm600_vm5 = vmor %vm598_vm4, %vm599_vm1 }
 0x101   : > { %v594_v53 = vmul.f32 %v1590_v45, %v593_v50 }
 0x102   : > { %v555_v54 = vmul.f32 0.5, %v554_v51  ;;  %v588_v55 = vrot.slane %v587_v52, 1  ;;  %1475 = vst [vmem:[#allocation4 + $0x8] sm:$0xff] %v1466_v17  }
 0x103   : > { %v1592_v57 = vpop.eup %1591  ;;  %v595_v58 = vmul.f32 0.5, %v594_v53 }
 0x104   : > { %v556_v59 = vsub.f32 1.5, %v555_v54  ;;  %v563_v60 = vmul.f32 %v1592_v57, %v551_v38  ;;  %v589_v61 = vadd.f32 %v588_v55, %v587_v52  ;;  %vm569_vm6 = vweird.f32 %v1592_v57 }
 0x105   : > { %v596_v16 = vsub.f32 1.5, %v595_v58  ;;  %vm570_vm8 = vmor %vm568_vm7, %vm569_vm6 }
 0x106   : > { %v557_v18 = vmul.f32 %v1588_v41, %v556_v59  ;;  %v564_v19 = vmul.f32 %v1592_v57, %v563_v60  ;;  %v591_v20 = vmax.f32 %v589_v61, 1e-24 }
 0x107   : > { %v597_v21 = vmul.f32 %v1590_v45, %v596_v16 }
 0x108   : > { %v561_v22 = vsel %vm560_vm3, %v1588_v41, %v557_v18  ;;  %v565_v23 = vmul.f32 0.5, %v564_v19  ;;  %1593 = vrsqrt.f32 %v591_v20  ;;  %vm608_vm10 = vweird.f32 %v591_v20 }
 0x109   : > { %v612_v24 = vmul.f32 0.8, %v561_v22  ;;  %v601_v25 = vsel %vm600_vm5, %v1590_v45, %v597_v21 }
 0x10a   : > { %v626_v26 = vmul.f32 %v601_v25, %v2075_v43  ;;  %v627_v28 = vmul.f32 %v601_v25, %v2085_v48  ;;  %v566_v30 = vsub.f32 1.5, %v565_v23 }
 0x10b   : > { %v614_v27 = vmul.f32 %v612_v24, %v2073_v42  ;;  %v615_v32 = vmul.f32 %v612_v24, %v2081_v46 }
 0x10c   : > { %v1451_v33 = vpack.c.bf16 %v627_v28, %v626_v26  ;;  %v567_v34 = vmul.f32 %v1592_v57, %v566_v30 }
 0x10d   : > { %v1441_v31 = vpack.c.bf16 %v615_v32, %v614_v27 }
 0x10e   : > { %v1594_v35 = vpop.eup %1593  ;;  %1452 = vst [vmem:[#allocation3] sm:$0xff] %v1451_v33   ;;  %v571_v36 = vsel %vm570_vm8, %v1592_v57, %v567_v34 }
 0x10f   : > { %1442 = vst [vmem:[#allocation2] sm:$0xff] %v1441_v31   ;;  %v613_v37 = vmul.f32 0.8, %v571_v36  ;;  %v603_v39 = vmul.f32 %v1594_v35, %v591_v20  ;;  %vm609_vm9 = vweird.f32 %v1594_v35 }
 0x110   : > { %vm610_vm11 = vmor %vm608_vm10, %vm609_vm9 }
 0x111   : > { %v616_v43 = vmul.f32 %v613_v37, %v2077_v44  ;;  %v617_v48 = vmul.f32 %v613_v37, %v2093_v56  ;;  %v604_v40 = vmul.f32 %v1594_v35, %v603_v39 }
 0x113   : > { %v1446_v42 = vpack.c.bf16 %v617_v48, %v616_v43  ;;  %v605_v41 = vmul.f32 0.5, %v604_v40 }
 0x115   : > { %1473 = vst [vmem:[#allocation2 + $0x8] sm:$0xff] %v1446_v42   ;;  %v606_v46 = vsub.f32 1.5, %v605_v41 }
 0x117   : > { %v607_v38 = vmul.f32 %v1594_v35, %v606_v46 }
 0x119   : > { %v611_v45 = vsel %vm610_vm11, %v1594_v35, %v607_v38 }
 0x11a   : > { %v628_v47 = vmul.f32 %v611_v45, %v2097_v63  ;;  %v629_v49 = vmul.f32 %v611_v45, %v2099_v29 }
 0x11c   : > { %v1456_v50 = vpack.c.bf16 %v629_v49, %v628_v47 }
 0x11e   : > { %1474 = vst [vmem:[#allocation3 + $0x8] sm:$0xff] %v1456_v50  }
 0x11f LB: >> { %s2123_s27 = sshll.u32 %s1862_s16, 3  ;;  %vm705_vm12 = vcmask 130048   ;;  %s667_s16 = sadd.s32 1, %s1862_s16   ;;  %s1862_s16 = sphi %s2117_s16, %s667_s16  }
 0x120   : >> { %s670_s30 = scalar_lea.vmem [#allocation2], %s2123_s27  ;;  %s674_s6 = scalar_lea.vmem [#allocation3], %s2123_s27 }
 0x121   : >> { %v1420_v44 = vld [vmem:[%s670_s30] sm:$0xff]  ;;  %s932_s9 = scalar_lea.vmem [#allocation4], %s2123_s27  ;;  %s958_s17 = scalar_lea.vmem [#allocation5], %s2123_s27 }
 0x122   : >> { %683 = vxpose.xlu0.c.b16.start.end [1/1] (short) %v1420_v44, 128  ;;  %p664_p1 = scmp.ge.s32.totalorder %s667_s16, 2  }
 0x123   : > { %s1437_s26 = sshll.u32 (%p664_p1), %s1926_s22, 5  ;;  %s1082_s14 = sshll.u32 (%p664_p1), %s2115_s24, 4  ;;  %s1083_s14 = int_to_ptr.vmem [resolvable:$true] %s1082_s14 }
 0x124   : > { %s1081_s15 = scalar_lea.hbm (%p664_p1), %s2298_s5, %s1437_s26  ;;  %s1069_s22 = scalar_lea.sflag (%p664_p1), [#allocation8], %s2020_s28 }
 0x125   : >> { %v1422_v56 = vld [vmem:[%s674_s6] sm:$0xff]  ;;  %s1084_s29 = sshll.u32 (%p664_p1), %s1081_s15, 4  ;;  %s1085_s29 = int_to_ptr.hbm [resolvable:$true] %s1084_s29 }
 0x126   : >> { %737 = vmatpush.bf16.msra.mxu0 %v1422_v56  ;;  %1484 = vmatpush.bf16.msra.mxu2 %v1422_v56  ;;  %s1794_s16 = sshra.s32 (%p664_p1), %s1085_s29, 4  ;;  %s1795_s16 = int_to_ptr.hbm [resolvable:$true] %s1794_s16 }
 0x127   : > { %s1796_s27 = scalar_lea.hbm (%p664_p1), %s1795_s16, 32  ;;  %p1801_p9 = scmp.lt.s32.totalorder (%p664_p1), %s1795_s16, %s2298_s5 }
 0x128   : > { %p1797_p4 = scmp.ne.s32.totalorder (%p664_p1), %s1795_s16, %s1796_s27 }
 0x12a   : > { %p1798_p8 = pnand (%p664_p1), %p1797_p4, %p1990_p3 }
 0x12c   : > { %p1799_p11 = pneg (%p664_p1), %p1798_p8 }
 0x1ce   : >> { %v691_v63 = vpop.trf.xlu0 }
 0x1cf   : >> { %1331 = vmatmul.msk.bf16.vlgmr.msra.gmra.mxu0 %vm705_vm12, %v691_v63 }
 0x1de   : >> { %v692_v29 = vpop.trf.xlu0 }
 0x1df   : >> { %1332 = vmatmul.msk.bf16.gmra.mxu0 %vm705_vm12, %v692_v29 }
 0x1ee   : >> { %v693_v51 = vpop.trf.xlu0 }
 0x1ef   : >> { %1333 = vmatmul.msk.bf16.gmra.mxu0 %vm705_vm12, %v693_v51 }
 0x1fe   : >> { %v694_v52 = vpop.trf.xlu0 }
 0x1ff   : >> { %1334 = vmatmul.msk.bf16.gmra.mxu0 %vm705_vm12, %v694_v52 }
 0x20e   : >> { %v695_v53 = vpop.trf.xlu0 }
 0x20f   : >> { %1335 = vmatmul.msk.bf16.vlgmr.msra.gmra.mxu2 %vm705_vm12, %v695_v53 }
 0x21e   : >> { %v696_v54 = vpop.trf.xlu0 }
 0x21f   : >> { %1336 = vmatmul.msk.bf16.gmra.mxu2 %vm705_vm12, %v696_v54 }
 0x22e   : >> { %v697_v55 = vpop.trf.xlu0 }
 0x22f   : >> { %1337 = vmatmul.msk.bf16.gmra.mxu2 %vm705_vm12, %v697_v55 }
 0x23e   : >> { %v698_v57 = vpop.trf.xlu0 }
 0x23f   : >> { %1338 = vmatmul.msk.bf16.gmra.mxu2 %vm705_vm12, %v698_v57 }
 0x24c   : >> { %v739_v59 = vpop.f32.mrf.mxu0 }
 0x24d   : >> { %v2160_v48 = vadd.f32 %v739_v59, %v2039_v0  ;;  %v1428_v0 = vld [vmem:[#allocation11] sm:$0xff] (%p664_p1) }
 0x254   : >> { %v741_v61 = vpop.f32.mrf.mxu0 }
 0x255   : >> { %v2172_v41 = vadd.f32 %v741_v61, %v2041_v1 }
 0x25c   : >> { %v744_v16 = vpop.f32.mrf.mxu0 }
 0x25d   : >> { %v2152_v39 = vadd.f32 %v744_v16, %v2043_v2 }
 0x264   : >> { %v746_v20 = vpop.f32.mrf.mxu0 }
 0x265   : >> { %v2168_v42 = vadd.f32 %v746_v20, %v2045_v3  ;;  %v1659_v3 = vld [vmem:[%s2296_s3] ss:$0 sm:$0xff] (%p664_p1) }
 0x26c   : >> { %v749_v23 = vpop.f32.mrf.mxu0 }
 0x26d   : >> { %v2147_v35 = vadd.f32 %v749_v23, %v2047_v4 }
 0x274   : >> { %v751_v28 = vpop.f32.mrf.mxu0 }
 0x275   : >> { %v2163_v40 = vadd.f32 %v751_v28, %v2049_v5 }
 0x27c   : >> { %v754_v33 = vpop.f32.mrf.mxu0 }
 0x27d   : >> { %v2142_v34 = vadd.f32 %v754_v33, %v2051_v6 }
 0x284   : >> { %v756_v37 = vpop.f32.mrf.mxu0 }
 0x285   : >> { %v2155_v43 = vadd.f32 %v756_v37, %v2053_v7 }
 0x292   : >> { %v759_v58 = vpop.f32.mrf.mxu2 }
 0x293   : >> { %v760_v27 = vadd.f32 %v759_v58, %v2055_v8 }
 0x29a   : >> { %v761_v60 = vpop.f32.mrf.mxu2 }
 0x29b   : >> { %v762_v36 = vadd.f32 %v761_v60, %v2057_v9 }
 0x2a2   : >> { %v764_v62 = vpop.f32.mrf.mxu2 }
 0x2a3   : >> { %v765_v25 = vadd.f32 %v764_v62, %v2059_v10 }
 0x2aa   : >> { %v766_v17 = vpop.f32.mrf.mxu2 }
 0x2ab   : >> { %v767_v31 = vadd.f32 %v766_v17, %v2061_v11 }
 0x2b2   : >> { %v769_v18 = vpop.f32.mrf.mxu2 }
 0x2b3   : >> { %v770_v19 = vadd.f32 %v769_v18, %v2063_v12 }
 0x2b5   : >> { %803 = vmax.xlane.f32.xlu1 %v770_v19 }
 0x2ba   : >> { %v771_v21 = vpop.f32.mrf.mxu2 }
 0x2bb   : >> { %v772_v22 = vadd.f32 %v771_v21, %v2065_v13 }
 0x2bd   : >> { %805 = vmax.xlane.f32.xlu2 %v772_v22 }
 0x2c2   : >> { %v774_v24 = vpop.f32.mrf.mxu2 }
 0x2c3   : >> { %v775_v26 = vadd.f32 %v774_v24, %v2067_v14 }
 0x2c5   : >> { %799 = vmax.xlane.f32.xlu2 %v765_v25  ;;  %807 = vmax.xlane.f32.xlu0 %v775_v26 }
 0x2ca   : >> { %v776_v30 = vpop.f32.mrf.mxu2 }
 0x2cb   : >> { %v777_v32 = vadd.f32 %v776_v30, %v2069_v15 }
 0x2cd   : >> { %795 = vmax.xlane.f32.xlu2 %v760_v27  ;;  %809 = vmax.xlane.f32.xlu1 %v777_v32 }
 0x2d5   : >> { %791 = vmax.xlane.f32.xlu2 %v2142_v34  ;;  %801 = vmax.xlane.f32.xlu1 %v767_v31 }
 0x2dd   : >> { %787 = vmax.xlane.f32.xlu2 %v2147_v35  ;;  %797 = vmax.xlane.f32.xlu1 %v762_v36 }
 0x2e5   : >> { %783 = vmax.xlane.f32.xlu2 %v2152_v39  ;;  %793 = vmax.xlane.f32.xlu1 %v2155_v43 }
 0x2ed   : >> { %779 = vmax.xlane.f32.xlu2 %v2160_v48  ;;  %789 = vmax.xlane.f32.xlu1 %v2163_v40 }
 0x2f5   : >> { %785 = vmax.xlane.f32.xlu1 %v2168_v42 }
 0x2fd   : >> { %781 = vmax.xlane.f32.xlu1 %v2172_v41 }
 0x328   : >> { %v804_v38 = vpop.xlane.xlu1 %803 }
 0x329   : >> { %v823_v44 = vsub.f32 %v770_v19, %v804_v38 }
 0x32b   : >> { %v851_v63 = vmul.f32 1.442695, %v823_v44 }
 0x330   : >> { %v806_v46 = vpop.xlane.xlu2 %805 }
 0x331   : >> { %v824_v54 = vsub.f32 %v772_v22, %v806_v46 }
 0x333   : >> { %v853_v58 = vmul.f32 1.442695, %v824_v54 }
 0x338   : >> { %v800_v45 = vpop.xlane.xlu2 %799  ;;  %v808_v47 = vpop.xlane.xlu0 %807 }
 0x339   : >> { %v825_v49 = vsub.f32 %v775_v26, %v808_v47  ;;  %v821_v55 = vsub.f32 %v765_v25, %v800_v45 }
 0x33b   : >> { %v855_v50 = vmul.f32 1.442695, %v825_v49  ;;  %v847_v59 = vmul.f32 1.442695, %v821_v55 }
 0x33d   : >> { %1595 = vpow2.f32 %v855_v50 }
 0x33e   : >> { %1597 = vpow2.f32 %v851_v63 }
 0x340   : >> { %v810_v56 = vpop.xlane.xlu1 %809  ;;  %v796_v51 = vpop.xlane.xlu2 %795 }
 0x341   : >> { %v826_v29 = vsub.f32 %v777_v32, %v810_v56  ;;  %v819_v16 = vsub.f32 %v760_v27, %v796_v51 }
 0x343   : >> { %v857_v52 = vmul.f32 1.442695, %v826_v29  ;;  %v2175_v53 = vpop.eup %1595  ;;  %v843_v19 = vmul.f32 1.442695, %v819_v16 }
 0x344   : >> { %887 = vadd.xlane.f32.xlu2 %v2175_v53  ;;  %v2178_v60 = vpop.eup %1597 }
 0x345   : >> { %1599 = vpow2.f32 %v857_v52 }
 0x346   : >> { %1601 = vpow2.f32 %v853_v58 }
 0x347   : >> { %1603 = vpow2.f32 %v847_v59 }
 0x348   : >> { %v802_v57 = vpop.xlane.xlu1 %801  ;;  %v792_v62 = vpop.xlane.xlu2 %791  ;;  %1605 = vpow2.f32 %v843_v19 }
 0x349   : >> { %v822_v17 = vsub.f32 %v767_v31, %v802_v57  ;;  %v817_v23 = vsub.f32 %v2142_v34, %v792_v62 }
 0x34b   : >> { %v2180_v61 = vpop.eup %1599  ;;  %v849_v20 = vmul.f32 1.442695, %v822_v17  ;;  %v839_v28 = vmul.f32 1.442695, %v817_v23 }
 0x34c   : >> { %889 = vadd.xlane.f32.xlu1 %v2180_v61  ;;  %883 = vadd.xlane.f32.xlu2 %v2178_v60  ;;  %v2184_v21 = vpop.eup %1601 }
 0x34d   : >> { %v2186_v22 = vpop.eup %1603  ;;  %1607 = vpow2.f32 %v849_v20 }
 0x34e   : >> { %v2191_v27 = vpop.eup %1605  ;;  %1609 = vpow2.f32 %v839_v28 }
 0x350   : >> { %v798_v18 = vpop.xlane.xlu1 %797  ;;  %v788_v24 = vpop.xlane.xlu2 %787 }
 0x351   : >> { %v820_v25 = vsub.f32 %v762_v36, %v798_v18  ;;  %v815_v33 = vsub.f32 %v2147_v35, %v788_v24 }
 0x353   : >> { %v845_v30 = vmul.f32 1.442695, %v820_v25  ;;  %v2193_v32 = vpop.eup %1607  ;;  %v835_v36 = vmul.f32 1.442695, %v815_v33 }
 0x354   : >> { %885 = vadd.xlane.f32.xlu1 %v2184_v21  ;;  %879 = vadd.xlane.f32.xlu2 %v2186_v22  ;;  %v2199_v38 = vpop.eup %1609 }
 0x355   : >> { %1611 = vpow2.f32 %v845_v30 }
 0x356   : >> { %1613 = vpow2.f32 %v835_v36 }
 0x358   : >> { %v794_v26 = vpop.xlane.xlu1 %793  ;;  %v784_v31 = vpop.xlane.xlu2 %783 }
 0x359   : >> { %v818_v34 = vsub.f32 %v2155_v43, %v794_v26  ;;  %v813_v47 = vsub.f32 %v2152_v39, %v784_v31 }
 0x35b   : >> { %v841_v46 = vmul.f32 1.442695, %v818_v34  ;;  %v2201_v45 = vpop.eup %1611  ;;  %v831_v49 = vmul.f32 1.442695, %v813_v47 }
 0x35c   : >> { %881 = vadd.xlane.f32.xlu1 %v2193_v32  ;;  %875 = vadd.xlane.f32.xlu2 %v2191_v27  ;;  %v2207_v56 = vpop.eup %1613 }
 0x35d   : >> { %1615 = vpow2.f32 %v841_v46 }
 0x35e   : >> { %1617 = vpow2.f32 %v831_v49 }
 0x360   : >> { %v790_v37 = vpop.xlane.xlu1 %789  ;;  %v780_v50 = vpop.xlane.xlu2 %779 }
 0x361   : >> { %v816_v35 = vsub.f32 %v2163_v40, %v790_v37  ;;  %v811_v29 = vsub.f32 %v2160_v48, %v780_v50 }
 0x363   : >> { %v837_v44 = vmul.f32 1.442695, %v816_v35  ;;  %v2209_v63 = vpop.eup %1615  ;;  %v827_v51 = vmul.f32 1.442695, %v811_v29 }
 0x364   : >> { %877 = vadd.xlane.f32.xlu1 %v2201_v45  ;;  %871 = vadd.xlane.f32.xlu2 %v2199_v38  ;;  %v2215_v52 = vpop.eup %1617 }
 0x365   : >> { %1619 = vpow2.f32 %v837_v44 }
 0x366   : >> { %1621 = vpow2.f32 %v827_v51 }
 0x368   : >> { %v786_v43 = vpop.xlane.xlu1 %785 }
 0x369   : >> { %v814_v39 = vsub.f32 %v2168_v42, %v786_v43 }
 0x36b   : >> { %v833_v40 = vmul.f32 1.442695, %v814_v39  ;;  %v2217_v55 = vpop.eup %1619 }
 0x36c   : >> { %873 = vadd.xlane.f32.xlu1 %v2209_v63  ;;  %867 = vadd.xlane.f32.xlu2 %v2207_v56  ;;  %v2222_v58 = vpop.eup %1621 }
 0x36d   : >> { %1623 = vpow2.f32 %v833_v40 }
 0x370   : >> { %v782_v54 = vpop.xlane.xlu1 %781 }
 0x371   : >> { %v812_v48 = vsub.f32 %v2172_v41, %v782_v54 }
 0x373   : >> { %v829_v57 = vmul.f32 1.442695, %v812_v48  ;;  %v2224_v59 = vpop.eup %1623 }
 0x374   : >> { %869 = vadd.xlane.f32.xlu1 %v2217_v55  ;;  %863 = vadd.xlane.f32.xlu2 %v2215_v52 }
 0x375   : >> { %1625 = vpow2.f32 %v829_v57 }
 0x37b   : >> { %v2228_v42 = vpop.eup %1625 }
 0x37c   : >> { %865 = vadd.xlane.f32.xlu1 %v2224_v59  ;;  %859 = vadd.xlane.f32.xlu2 %v2222_v58 }
 0x384   : >> { %861 = vadd.xlane.f32.xlu1 %v2228_v42 }
 0x3b7   : >> { %v888_v62 = vpop.xlane.xlu2 %887 }
 0x3b8   : >> { %1627 = vrcp.f32 %v888_v62 }
 0x3be   : >> { %v1628_v41 = vpop.eup %1627 }
 0x3bf   : >> { %v890_v16 = vpop.xlane.xlu1 %889  ;;  %v884_v17 = vpop.xlane.xlu2 %883  ;;  %v921_v23 = vmul.f32 %v1628_v41, %v2175_v53 }
 0x3c0   : >> { %1629 = vrcp.f32 %v890_v16 }
 0x3c1   : >> { %1631 = vrcp.f32 %v884_v17 }
 0x3c6   : >> { %v1630_v18 = vpop.eup %1629 }
 0x3c7   : >> { %v886_v19 = vpop.xlane.xlu1 %885  ;;  %v880_v20 = vpop.xlane.xlu2 %879  ;;  %v922_v24 = vmul.f32 %v1630_v18, %v2180_v61 }
 0x3c8   : >> { %1633 = vrcp.f32 %v886_v19  ;;  %v1632_v26 = vpop.eup %1631 }
 0x3c9   : >> { %v930_v25 = vpack.c.bf16 %v922_v24, %v921_v23  ;;  %1635 = vrcp.f32 %v880_v20  ;;  %v919_v34 = vmul.f32 %v1632_v26, %v2178_v60 }
 0x3cb   : >> { %941 = vmatpush.bf16.xpose.msra.mxu1 %v930_v25 }
 0x3ce   : >> { %v1634_v28 = vpop.eup %1633 }
 0x3cf   : >> { %v882_v30 = vpop.xlane.xlu1 %881  ;;  %v876_v33 = vpop.xlane.xlu2 %875  ;;  %v920_v31 = vmul.f32 %v1634_v28, %v2184_v21 }
 0x3d0   : >> { %1637 = vrcp.f32 %v882_v30  ;;  %v1636_v36 = vpop.eup %1635  ;;  %v1424_v30 = vld [vmem:[%s932_s9] sm:$0xff]  ;;  %s1800_s9 = scalar_lea.hbm (%p664_p1), %s2298_s5, 64 }
 0x3d1   : >> { %v929_v37 = vpack.c.bf16 %v920_v31, %v919_v34  ;;  %1639 = vrcp.f32 %v876_v33  ;;  %v917_v47 = vmul.f32 %v1636_v36, %v2186_v22  ;;  %v1432_v31 = vld [vmem:[#allocation11 + $0x20] sm:$0xff] (%p664_p1)  ;;  %v1430_v36 = vld [vmem:[#allocation11 + $0x10] sm:$0xff] (%p664_p1)  ;;  %p1802_p2 = scmp.lt.s32.totalorder (%p664_p1), %s1800_s9, %s1796_s27 }
 0x3d3   : >> { %942 = vmatpush.bf16.xpose.msra.mxu1 %v929_v37  ;;  %v1431_v37 = vld [vmem:[#allocation11 + $0x18] sm:$0xff] (%p664_p1)  ;;  %p1803_p10 = por (%p664_p1), %p1802_p2, %p1801_p9 }
 0x3d5   : > { %p1804_p12 = pnand (%p664_p1), %p1803_p10, %p1799_p11 }
 0x3d6   : >> { %v1638_v46 = vpop.eup %1637 }
 0x3d7   : >> { %v878_v53 = vpop.xlane.xlu1 %877  ;;  %v872_v61 = vpop.xlane.xlu2 %871  ;;  %v918_v35 = vmul.f32 %v1638_v46, %v2193_v32  ;;  %v1429_v46 = vld [vmem:[#allocation11 + $0x8] sm:$0xff] (%p664_p1) }
 0x3d8   : >> { %1641 = vrcp.f32 %v878_v53  ;;  %v1640_v43 = vpop.eup %1639 }
 0x3d9   : >> { %v928_v49 = vpack.c.bf16 %v918_v35, %v917_v47  ;;  %1643 = vrcp.f32 %v872_v61  ;;  %v915_v44 = vmul.f32 %v1640_v43, %v2191_v27 }
 0x3db   : >> { %943 = vmatpush.bf16.xpose.msra.mxu1 %v928_v49 }
 0x3de   : >> { %v1642_v50 = vpop.eup %1641 }
 0x3df   : >> { %v874_v60 = vpop.xlane.xlu1 %873  ;;  %v868_v21 = vpop.xlane.xlu2 %867  ;;  %v916_v29 = vmul.f32 %v1642_v50, %v2201_v45 }
 0x3e0   : >> { %1645 = vrcp.f32 %v874_v60  ;;  %v1644_v51 = vpop.eup %1643 }
 0x3e1   : >> { %v927_v39 = vpack.c.bf16 %v916_v29, %v915_v44  ;;  %1647 = vrcp.f32 %v868_v21  ;;  %v913_v32 = vmul.f32 %v1644_v51, %v2199_v38 }
 0x3e3   : >> { %944 = vmatpush.bf16.xpose.msra.mxu1 %v927_v39 }
 0x3e6   : >> { %v1646_v40 = vpop.eup %1645 }
 0x3e7   : >> { %v870_v22 = vpop.xlane.xlu1 %869  ;;  %v914_v54 = vmul.f32 %v1646_v40, %v2209_v63  ;;  %v864_v48 = vpop.xlane.xlu2 %863 }
 0x3e8   : >> { %1649 = vrcp.f32 %v870_v22  ;;  %v1648_v62 = vpop.eup %1647 }
 0x3e9   : >> { %v926_v57 = vpack.c.bf16 %v914_v54, %v913_v32  ;;  %1651 = vrcp.f32 %v864_v48  ;;  %v911_v45 = vmul.f32 %v1648_v62, %v2207_v56 }
 0x3eb   : >> { %945 = vmatpush.bf16.xpose.msra.mxu1 %v926_v57 }
 0x3ee   : >> { %v1650_v16 = vpop.eup %1649 }
 0x3ef   : >> { %v866_v27 = vpop.xlane.xlu1 %865  ;;  %v912_v17 = vmul.f32 %v1650_v16, %v2217_v55  ;;  %v860_v18 = vpop.xlane.xlu2 %859 }
 0x3f0   : >> { %1653 = vrcp.f32 %v866_v27  ;;  %v1652_v38 = vpop.eup %1651 }
 0x3f1   : >> { %v925_v41 = vpack.c.bf16 %v912_v17, %v911_v45  ;;  %1655 = vrcp.f32 %v860_v18  ;;  %v909_v20 = vmul.f32 %v1652_v38, %v2215_v52 }
 0x3f3   : >> { %946 = vmatpush.bf16.xpose.msra.mxu1 %v925_v41 }
 0x3f6   : >> { %v1654_v19 = vpop.eup %1653 }
 0x3f7   : >> { %v862_v63 = vpop.xlane.xlu1 %861  ;;  %v910_v23 = vmul.f32 %v1654_v19, %v2224_v59  ;;  %v1656_v56 = vpop.eup %1655  ;;  %v1435_v59 = vld [vmem:[#allocation11 + $0x38] sm:$0xff] (%p664_p1) }
 0x3f8   : >> { %1657 = vrcp.f32 %v862_v63  ;;  %v907_v55 = vmul.f32 %v1656_v56, %v2222_v58  ;;  %1045 = vmatpush.bf16.msra.mxu0 (%p664_p1), %v1435_v59  ;;  %v1434_v58 = vld [vmem:[#allocation11 + $0x30] sm:$0xff] (%p664_p1) }
 0x3f9   : >> { %v924_v24 = vpack.c.bf16 %v910_v23, %v909_v20 }
 0x3fb   : >> { %947 = vmatpush.bf16.xpose.msra.mxu1 %v924_v24 }
 0x3fc   : > { %1046 = vmatpush.bf16.msra.mxu0 (%p664_p1), %v1434_v58 }
 0x3fe   : >> { %v1658_v25 = vpop.eup %1657 }
 0x3ff   : >> { %v908_v26 = vmul.f32 %v1658_v25, %v2228_v42  ;;  %v1433_v42 = vld [vmem:[#allocation11 + $0x28] sm:$0xff] (%p664_p1) }
 0x400   : > { %1047 = vmatpush.bf16.msra.mxu0 (%p664_p1), %v1433_v42 }
 0x401   : >> { %v923_v28 = vpack.c.bf16 %v908_v26, %v907_v55 }
 0x403   : >> { %948 = vmatpush.bf16.xpose.msra.mxu1 %v923_v28 }
 0x404   : > { %1048 = vmatpush.bf16.msra.mxu0 (%p664_p1), %v1432_v31 }
 0x408   : > { %1049 = vmatpush.bf16.msra.mxu0 (%p664_p1), %v1431_v37 }
 0x40a   : >> { %949 = vmatmul.bf16.vlgmr.msra.gmra.mxu1 %v1424_v30 }
 0x40b   : > { %1485 = vmatpush.bf16.msra.mxu1 (%p664_p1), %v1435_v59 }
 0x40c   : > { %1050 = vmatpush.bf16.msra.mxu0 (%p664_p1), %v1430_v36 }
 0x40f   : > { %1486 = vmatpush.bf16.msra.mxu1 (%p664_p1), %v1434_v58 }
 0x410   : > { %1051 = vmatpush.bf16.msra.mxu0 (%p664_p1), %v1429_v46 }
 0x413   : > { %1487 = vmatpush.bf16.msra.mxu1 (%p664_p1), %v1433_v42 }
 0x414   : > { %1052 = vmatpush.bf16.msra.mxu0 (%p664_p1), %v1428_v0 }
 0x417   : > { %1488 = vmatpush.bf16.msra.mxu1 (%p664_p1), %v1432_v31 }
 0x41b   : > { %1489 = vmatpush.bf16.msra.mxu1 (%p664_p1), %v1431_v37 }
 0x41f   : > { %1490 = vmatpush.bf16.msra.mxu1 (%p664_p1), %v1430_v36 }
 0x423   : > { %1491 = vmatpush.bf16.msra.mxu1 (%p664_p1), %v1429_v46 }
 0x427   : > { %1492 = vmatpush.bf16.msra.mxu1 (%p664_p1), %v1428_v0 }
 0x487   : >> { %v950_v33 = vpop.f32.mrf.mxu1 }
 0x48e   : > { %666 = sbr.rel (!%p664_p1) target bundleno = 287 (0x11f), region = 108 }
 0x48f   : >> { %v952_v34 = vpop.f32.mrf.mxu1 }
 0x490   : >> { %v1471_v52 = vpack.c.bf16 %v952_v34, %v950_v33 }
 0x492   : >> { %1472 = vst [vmem:[%s958_s17] sm:$0xff] %v1471_v52  }
 0x499   : > { %v1426_v1 = vld [vmem:[#allocation5] sm:$0xff]  ;;  %v1427_v2 = vld [vmem:[#allocation5 + $0x8] sm:$0xff] }
 0x49a   : > { %1053 = vmatmul.bf16.vlgmr.msra.gmra.mxu0 %v1426_v1  ;;  %1058 = vmatmul.bf16.vlgmr.msra.gmra.mxu1 %v1427_v2 }
 0x517   : > { %v1054_v4 = vpop.f32.mrf.mxu0  ;;  %v1059_v5 = vpop.f32.mrf.mxu1 }
 0x518   : > { %v1055_v6 = vadd.f32 %v1659_v3, %v1054_v4  ;;  %v1060_v7 = vadd.f32 %v1659_v3, %v1059_v5 }
 0x51a   : > { %1064 = vst [vmem:[%s2115_s24] sm:$0xff] %v1055_v6 }
 0x51b   : > { %1066 = vst [vmem:[%s2115_s24 + $0x10] sm:$0xff] %v1060_v7 }
 0x51f   : > { %v1056_v8 = vpop.f32.mrf.mxu0  ;;  %v1061_v9 = vpop.f32.mrf.mxu1 }
 0x520   : > { %v1057_v10 = vadd.f32 %v1659_v3, %v1056_v8  ;;  %v1062_v11 = vadd.f32 %v1659_v3, %v1061_v9 }
 0x522   : > { %1065 = vst [vmem:[%s2115_s24 + $0x8] sm:$0xff] %v1057_v10 }
 0x523   : > { %1067 = vst [vmem:[%s2115_s24 + $0x18] sm:$0xff] %v1062_v11 }
 0x524   : > { %1807 = shalt.err (!%p1804_p12)
}
 0x525   : > { %s1873_s28 = smov 128   ;;  %s1874_s24 = smov 8  }
 0x526   : > { %1507 = dma.vmem_to_hbm [thread:$0]  (%p1990_p3), %s1083_s14, 512, %s1085_s29, %s1069_s22, %s1873_s28, %s1873_s28, %s1874_s24  }
 0x527 PF: > { %s1099_s23 = sand.u32 1, %s1846_s18   ;;  %p2307_p13 = scmp.ge.s32.totalorder %s1858_s21, 2 }
 0x528   : > { %s1100_s26 = scalar_lea.sflag [#allocation8], %s1099_s23 }
 0x529   : > { %p1524_p0 = pnand %p2307_p13, %p1940_p6 }
 0x52b   : > { %p1525_p5 = pneg %p1524_p0 }
 0x52d   : > { %1841 = dma.done.wait (%p1525_p5), %s1100_s26, 512  }
 0x52e   : > { %1843 = vsyncadd (%p1525_p5), %s1100_s26, 4294966784  ;;  %p20_p7 = scmp.ge.s32.totalorder %s1977_s8, 4   ;;  %s2308_s18 = smov %s1850_s19 }
 0x52f   : > { %s2309_s19 = smov %s1854_s20  ;;  %s2310_s20 = smov %s1986_s11 }
 0x530   : > { %s2311_s21 = smov %s1977_s8  ;;  %22 = sbr.rel (!%p20_p7) target bundleno = 7 (0x7), region = 119 }
 0x535   :  { %1106 = vsyncpa [#allocation7], 1 }
 0x536   :  { %1108 = vsyncpa [#allocation7 + $0x1], 1 }
 0x537   :  { %1109 = vsyncpa [#allocation10], 1 }
 0x538   :  { %1110 = vsyncpa [#allocation13], 1 }
 0x539   :  { %1111 = vsyncpa [#allocation8], 1 }
 0x53a   :  { %1113 = vsyncpa [#allocation8 + $0x1], 1 }

</bundles_post_ra>
